<compile_context>
chip_gen: v7x
topology: tpu7x:2x2x1
jax: 0.10.0
libtpu: 0.0.40
codegen_flags: <defaults>
</compile_context>

<pallas_src>
import numpy as np
import jax
import jax.numpy as jnp
from jax.experimental import pallas as pl
from jax.experimental.pallas import tpu as pltpu

# ----------------------- module-consistent config -----------------------
N_AGENTS   = 3            # args.n_agents
AGENT_ID   = 1            # agent_id
OBS_DIM    = 10           # args.input_dim_self
ACT_DIM    = 5            # args.action_shape[agent_id]
HIDDEN     = 64           # hidden_dim
HEADS      = 2            # attention_heads
ATTN_DIM   = HIDDEN // HEADS
BATCH      = 256          # args.batch_size (small demo size)
MAX_ACTION = 2.0          # args.high_action

D_IN     = OBS_DIM + ACT_DIM
D_IN_PAD = 16                                # per-agent padded input width
SQRT_D   = float(np.sqrt(ATTN_DIM))
OTHERS   = [i for i in range(N_AGENTS) if i != AGENT_ID]
KD       = HEADS * ATTN_DIM                  # packed K width = packed V width

# packed-input rows: 3 agents x 16 features, zero-padded to HIDDEN so the
# block-diagonal encoder weight shares the 64-wide column layout of every
# other weight block (single packed weight operand).
assert N_AGENTS * D_IN_PAD <= HIDDEN
X_ROWS = HIDDEN

# packed weight row offsets (columns are always HIDDEN wide; all offsets are
# multiples of 16 -> bf16 sublane-tile aligned)
R_W1   = 0
R_Q    = R_W1 + N_AGENTS * HIDDEN            # 192
R_KV   = R_Q + KD                            # 256
R_W2S  = R_KV + 2 * KD                       # 384
R_W2A  = R_W2S + HIDDEN                      # 448
R_WO   = R_W2A + KD                          # 512
W_ROWS = R_WO + 8                            # 520 (wo row padded to 8 rows)

# packed bias row offsets (f32, multiples of 8)
B_B1   = 0
B_BV   = B_B1 + N_AGENTS * HIDDEN            # 192
B_B2   = B_BV + KD                           # 256
B_BO   = B_B2 + HIDDEN                       # 320
B_ROWS = B_BO + 1                            # 321

# bf16 MXU inputs, f32 accumulation.  Safe on v5e too: its MXU supports bf16;
# only the VPU/EUP lack bf16, and all elementwise work here stays f32.
MM_DTYPE = jnp.bfloat16


def _mm(a, b):
    return jnp.dot(a.astype(MM_DTYPE), b.astype(MM_DTYPE),
                   preferred_element_type=jnp.float32)


# --------------------------------- kernel --------------------------------------
def _attention_critic_kernel(x_ref, w_ref, b_ref, q_ref):
    # x_ref : [X_ROWS, BB]     packed (state|act|pad) per agent, batch on lanes
    # w_ref : [W_ROWS, HIDDEN] packed weights (bf16)
    # b_ref : [B_ROWS, 1]      packed biases (f32)
    # q_ref : [1, BB]          lane-dense q row
    x = x_ref[...]

    w1bd = w_ref[R_W1:R_Q, :]
    wq   = w_ref[R_Q:R_KV, :]
    wkv  = w_ref[R_KV:R_W2S, :]
    w2s  = w_ref[R_W2S:R_W2A, :]
    w2a  = w_ref[R_W2A:R_WO, :]
    wo   = w_ref[R_WO:R_WO + 8, :]

    b1 = b_ref[B_B1:B_BV, :]
    bv = b_ref[B_BV:B_B2, :]
    b2 = b_ref[B_B2:B_BO, :]
    bo = b_ref[B_BO:B_BO + 1, :]

    # --- all 3 per-agent encoders in ONE block-diagonal matmul -------------
    enc_all = jnp.maximum(_mm(w1bd, x) + b1, 0.0)            # [3*HIDDEN, BB]
    enc_self   = enc_all[AGENT_ID * HIDDEN:(AGENT_ID + 1) * HIDDEN, :]
    enc_others = [enc_all[i * HIDDEN:(i + 1) * HIDDEN, :] for i in OTHERS]

    # --- fused head projections (feature-major) ----------------------------
    q_all = _mm(wq, enc_self)                                # [KD, BB]
    kv    = [_mm(wkv, e) for e in enc_others]                # each [2*KD, BB]
    k_all = [t[:KD, :] for t in kv]
    v_all = [jnp.maximum(t[KD:, :] + bv, 0.0) for t in kv]

    # --- fc2: split-weight accumulation (no [enc_self | heads] concat) -----
    x2 = _mm(w2s, enc_self) + b2                             # [HIDDEN, BB]

    inv_sqrt_d = 1.0 / SQRT_D
    heads = []
    for h in range(HEADS):
        s = h * ATTN_DIM
        sel = q_all[s:s + ATTN_DIM, :]                       # [ATTN_DIM, BB]
        # lane-dense [1, BB] logits per other agent
        logits = [jnp.sum(sel * k[s:s + ATTN_DIM, :], axis=0, keepdims=True)
                  * inv_sqrt_d for k in k_all]
        m = logits[0]
        for l in logits[1:]:
            m = jnp.maximum(m, l)
        exps = [jnp.exp(l - m) for l in logits]
        denom = exps[0]
        for e in exps[1:]:
            denom = denom + e
        inv = pl.reciprocal(denom, approx=True)              # EUP slot

        head = v_all[0][s:s + ATTN_DIM, :] * (exps[0] * inv)
        for j in range(1, len(OTHERS)):
            head = head + v_all[j][s:s + ATTN_DIM, :] * (exps[j] * inv)
        heads.append(head)                                   # [ATTN_DIM, BB]

    # sublane-aligned pack of both heads -> single fc2-attention matmul
    heads_packed = jnp.concatenate(heads, axis=0)            # [KD, BB]
    x2 = jnp.maximum(x2 + _mm(w2a, heads_packed), 0.0)       # [HIDDEN, BB]

    # q_out: lane-dense [1, BB] row (rows 1..7 of wo are zero padding)
    q_row = _mm(wo, x2)[0:1, :] + bo
    q_ref[...] = q_row.astype(q_ref.dtype)


# --------------------------------- wrapper --------------------------------------
def prepare_params(params):
    """Pack PyTorch-style parameters into the kernel's packed/transposed layout."""
    w1, b1, wk, wq, wv, bv, w2, b2, wo, bo = params

    # fold 1/max_action into the action columns; pad D_IN -> D_IN_PAD
    w1f = jnp.concatenate(
        [w1[:, :OBS_DIM, :], w1[:, OBS_DIM:, :] * (1.0 / MAX_ACTION)], axis=1)
    w1p = jnp.pad(w1f, ((0, 0), (0, D_IN_PAD - D_IN), (0, 0)))      # [A,16,H]
    w1t = jnp.transpose(w1p, (0, 2, 1))                             # [A,H,16]
    w1bd = jnp.zeros((N_AGENTS * HIDDEN, HIDDEN), jnp.float32)      # block-diag
    for a in range(N_AGENTS):
        w1bd = w1bd.at[a * HIDDEN:(a + 1) * HIDDEN,
                       a * D_IN_PAD:(a + 1) * D_IN_PAD].set(w1t[a])

    wq_t = jnp.concatenate([wq[h] for h in range(HEADS)], axis=-1).T   # [KD,H]
    wk_t = jnp.concatenate([wk[h] for h in range(HEADS)], axis=-1).T   # [KD,H]
    wv_t = jnp.concatenate([wv[h] for h in range(HEADS)], axis=-1).T   # [KD,H]
    wkv_t = jnp.concatenate([wk_t, wv_t], axis=0)                      # [2KD,H]
    w2s_t = w2[:HIDDEN, :].T                                           # [H,H]
    w2a_t = w2[HIDDEN:, :].T                                           # [H,KD]
    wo_t  = jnp.pad(wo.T, ((0, 7), (0, 0)))                            # [8,H]

    wbig = jnp.concatenate(
        [w1bd, wq_t, wkv_t, w2s_t, w2a_t, wo_t], axis=0).astype(MM_DTYPE)

    b1_col = jnp.transpose(b1, (0, 2, 1)).reshape(N_AGENTS * HIDDEN, 1)
    bv_col = jnp.concatenate([bv[h] for h in range(HEADS)], axis=-1).T  # [KD,1]
    b2_col = b2.T                                                       # [H,1]
    bcol = jnp.concatenate([b1_col, bv_col, b2_col, bo],
                           axis=0).astype(jnp.float32)                  # [321,1]

    assert wbig.shape == (W_ROWS, HIDDEN)
    assert bcol.shape == (B_ROWS, 1)
    return wbig, bcol


def pack_inputs(state_cat, act_cat):
    """[A,B,obs] + [A,B,act] -> feature-major [X_ROWS, B] (batch on lanes)."""
    batch = state_cat.shape[1]
    inp = jnp.concatenate([state_cat, act_cat], axis=-1)               # [A,B,15]
    inp = jnp.pad(inp, ((0, 0), (0, 0), (0, D_IN_PAD - D_IN)))         # [A,B,16]
    x = jnp.transpose(inp, (0, 2, 1)).reshape(N_AGENTS * D_IN_PAD, batch)
    x = jnp.pad(x, ((0, X_ROWS - N_AGENTS * D_IN_PAD), (0, 0)))        # [64,B]
    return x


def _num_batch_tiles(batch):
    """One 'parallel' grid step per TensorCore: 2 on v7x, 1 on v5e/v6e."""
    kind = ""
    try:
        kind = jax.devices()[0].device_kind.lower()
    except Exception:
        pass
    if "v7" in kind and batch % 256 == 0:
        return 2
    return 1


def attention_critic(state_cat, act_cat, params):
    batch = state_cat.shape[1]
    wbig, bcol = prepare_params(params)
    x = pack_inputs(state_cat, act_cat)

    n_tiles = _num_batch_tiles(batch)
    bb = batch // n_tiles
    assert n_tiles * bb == batch                      # no rows silently dropped
    assert bb == batch or bb % 128 == 0, "batch tile must be lane-aligned"

    q_row = pl.pallas_call(
        _attention_critic_kernel,
        out_shape=jax.ShapeDtypeStruct((1, batch), jnp.float32),
        grid=(n_tiles,),
        in_specs=[
            pl.BlockSpec((X_ROWS, bb), lambda b: (0, b)),      # activations
            pl.BlockSpec((W_ROWS, HIDDEN), lambda b: (0, 0)),  # packed weights
            pl.BlockSpec((B_ROWS, 1), lambda b: (0, 0)),       # packed biases
        ],
        out_specs=pl.BlockSpec((1, bb), lambda b: (0, b)),
        compiler_params=pltpu.CompilerParams(
            dimension_semantics=("parallel",)),
    )(x, wbig, bcol)

    # lane-dense [1, batch] -> module layout [batch, 1]
    return q_row.reshape(batch, 1)


# ----------------------------- pure-JAX reference --------------------------------
def reference(state_cat, act_cat, params):
    (w1, b1, wk, wq, wv, bv, w2, b2, wo, bo) = params
    act = act_cat / MAX_ACTION
    inps = jnp.concatenate([state_cat, act], axis=-1)
    encs = [jnp.maximum(inps[i] @ w1[i] + b1[i], 0.0) for i in range(N_AGENTS)]
    enc_self = encs[AGENT_ID]
    enc_others = [encs[i] for i in OTHERS]
    heads = []
    for h in range(HEADS):
        sel = enc_self @ wq[h]
        keys = [e @ wk[h] for e in enc_others]
        vals = [jnp.maximum(e @ wv[h] + bv[h], 0.0) for e in enc_others]
        logits = jnp.stack([jnp.sum(sel * k, -1) for k in keys], axis=-1) / SQRT_D
        w = jax.nn.softmax(logits, axis=-1)
        heads.append(sum(vals[j] * w[:, j:j + 1] for j in range(len(OTHERS))))
    others_all = jnp.concatenate(heads, axis=-1)
    x1 = jnp.concatenate([enc_self, others_all], axis=-1)
    x2 = jnp.maximum(x1 @ w2 + b2, 0.0)
    return x2 @ wo + bo


# ----------------------------------- main ----------------------------------------
if __name__ == "__main__":
    key = jax.random.PRNGKey(0)
    ks = jax.random.split(key, 12)

    def u(k, shape, fan_in):
        bound = 1.0 / np.sqrt(fan_in)
        return jax.random.uniform(k, shape, jnp.float32, -bound, bound)

    # Deterministic parameter init (PyTorch-Linear-style uniform ranges).
    w1 = u(ks[0], (N_AGENTS, D_IN, HIDDEN), D_IN)
    b1 = u(ks[1], (N_AGENTS, 1, HIDDEN), D_IN)
    wk = u(ks[2], (HEADS, HIDDEN, ATTN_DIM), HIDDEN)
    wq = u(ks[3], (HEADS, HIDDEN, ATTN_DIM), HIDDEN)
    wv = u(ks[4], (HEADS, HIDDEN, ATTN_DIM), HIDDEN)
    bv = u(ks[5], (HEADS, 1, ATTN_DIM), HIDDEN)
    w2 = u(ks[6], (2 * HIDDEN, HIDDEN), 2 * HIDDEN)
    b2 = u(ks[7], (1, HIDDEN), 2 * HIDDEN)
    wo = u(ks[8], (HIDDEN, 1), HIDDEN)
    bo = u(ks[9], (1, 1), HIDDEN)
    params = (w1, b1, wk, wq, wv, bv, w2, b2, wo, bo)

    state_cat = jax.random.normal(ks[10], (N_AGENTS, BATCH, OBS_DIM), jnp.float32)
    act_cat = jax.random.uniform(ks[11], (N_AGENTS, BATCH, ACT_DIM), jnp.float32,
                                 -MAX_ACTION, MAX_ACTION)

    q = jax.block_until_ready(attention_critic(state_cat, act_cat, params))
    q_ref = jax.block_until_ready(reference(state_cat, act_cat, params))

    # bf16 MXU inputs + approx softmax reciprocal -> bf16-appropriate tolerance
    np.testing.assert_allclose(np.asarray(q), np.asarray(q_ref),
                               rtol=5e-2, atol=3e-2)
    print("KERNEL_OK")
</pallas_src>

<mosaic_0001>
module attributes {stable_mosaic.version = 11 : i64} {
  func.func @_attention_critic_kernel(%arg0: i32, %arg1: memref<64x256xf32, #tpu.memory_space<vmem>>, %arg2: memref<520x64xbf16, #tpu.memory_space<vmem>>, %arg3: memref<321x1xf32, #tpu.memory_space<vmem>>, %arg4: memref<1x256xf32, #tpu.memory_space<vmem>>) attributes {dimension_semantics = [#tpu.dimension_semantics<parallel>], iteration_bounds = array<i64: 1>, scalar_prefetch = 0 : i64, scratch_operands = 0 : i64, tpu.core_type = #tpu.core_type<tc>, window_params = [{transform_indices = @transform_0, window_bounds = array<i64: 64, 256>}, {pipeline_mode = #tpu.pipeline_mode<synchronous>, transform_indices = @transform_1, window_bounds = array<i64: 520, 64>}, {pipeline_mode = #tpu.pipeline_mode<synchronous>, transform_indices = @transform_2, window_bounds = array<i64: 321, 1>}, {transform_indices = @transform_3, window_bounds = array<i64: 1, 256>}]} {
    %c0 = arith.constant 0 : index
    %c0_0 = arith.constant 0 : index
    %0 = vector.load %arg1[%c0, %c0_0] : memref<64x256xf32, #tpu.memory_space<vmem>>, vector<64x256xf32>
    %c0_1 = arith.constant 0 : index
    %c0_2 = arith.constant 0 : index
    %1 = vector.load %arg2[%c0_1, %c0_2] : memref<520x64xbf16, #tpu.memory_space<vmem>>, vector<192x64xbf16>
    %c192 = arith.constant 192 : index
    %c0_3 = arith.constant 0 : index
    %2 = vector.load %arg2[%c192, %c0_3] : memref<520x64xbf16, #tpu.memory_space<vmem>>, vector<64x64xbf16>
    %c256 = arith.constant 256 : index
    %c0_4 = arith.constant 0 : index
    %3 = vector.load %arg2[%c256, %c0_4] : memref<520x64xbf16, #tpu.memory_space<vmem>>, vector<128x64xbf16>
    %c384 = arith.constant 384 : index
    %c0_5 = arith.constant 0 : index
    %4 = vector.load %arg2[%c384, %c0_5] : memref<520x64xbf16, #tpu.memory_space<vmem>>, vector<64x64xbf16>
    %c448 = arith.constant 448 : index
    %c0_6 = arith.constant 0 : index
    %5 = vector.load %arg2[%c448, %c0_6] : memref<520x64xbf16, #tpu.memory_space<vmem>>, vector<64x64xbf16>
    %c512 = arith.constant 512 : index
    %c0_7 = arith.constant 0 : index
    %6 = vector.load %arg2[%c512, %c0_7] : memref<520x64xbf16, #tpu.memory_space<vmem>>, vector<8x64xbf16>
    %c0_8 = arith.constant 0 : index
    %c0_9 = arith.constant 0 : index
    %7 = vector.load %arg3[%c0_8, %c0_9] : memref<321x1xf32, #tpu.memory_space<vmem>>, vector<192x1xf32>
    %c192_10 = arith.constant 192 : index
    %c0_11 = arith.constant 0 : index
    %8 = vector.load %arg3[%c192_10, %c0_11] : memref<321x1xf32, #tpu.memory_space<vmem>>, vector<64x1xf32>
    %c256_12 = arith.constant 256 : index
    %c0_13 = arith.constant 0 : index
    %9 = vector.load %arg3[%c256_12, %c0_13] : memref<321x1xf32, #tpu.memory_space<vmem>>, vector<64x1xf32>
    %c320 = arith.constant 320 : index
    %c0_14 = arith.constant 0 : index
    %10 = vector.load %arg3[%c320, %c0_14] : memref<321x1xf32, #tpu.memory_space<vmem>>, vector<1x1xf32>
    %11 = arith.truncf %0 : vector<64x256xf32> to vector<64x256xbf16>
    %cst = arith.constant dense<0.000000e+00> : vector<192x256xf32>
    %12 = tpu.matmul %1, %11, %cst {dimension_numbers = #tpu.dot_dimension_numbers<[1], [0], [0], [1], [0, 0, 1, 1], [], []>} : vector<192x64xbf16>, vector<64x256xbf16>, vector<192x256xf32> -> vector<192x256xf32>
    %13 = vector.broadcast %7 : vector<192x1xf32> to vector<192x256xf32>
    %14 = arith.addf %12, %13 : vector<192x256xf32>
    %cst_15 = arith.constant 0.000000e+00 : f32
    %15 = vector.broadcast %cst_15 : f32 to vector<192x256xf32>
    %16 = arith.maximumf %14, %15 : vector<192x256xf32>
    %17 = vector.extract_strided_slice %16 {offsets = [64, 0], sizes = [64, 256], strides = [1, 1]} : vector<192x256xf32> to vector<64x256xf32>
    %18 = vector.extract_strided_slice %16 {offsets = [0, 0], sizes = [64, 256], strides = [1, 1]} : vector<192x256xf32> to vector<64x256xf32>
    %19 = vector.extract_strided_slice %16 {offsets = [128, 0], sizes = [64, 256], strides = [1, 1]} : vector<192x256xf32> to vector<64x256xf32>
    %20 = arith.truncf %17 : vector<64x256xf32> to vector<64x256xbf16>
    %cst_16 = arith.constant dense<0.000000e+00> : vector<64x256xf32>
    %21 = tpu.matmul %2, %20, %cst_16 {dimension_numbers = #tpu.dot_dimension_numbers<[1], [0], [0], [1], [0, 0, 1, 1], [], []>} : vector<64x64xbf16>, vector<64x256xbf16>, vector<64x256xf32> -> vector<64x256xf32>
    %22 = arith.truncf %18 : vector<64x256xf32> to vector<64x256xbf16>
    %cst_17 = arith.constant dense<0.000000e+00> : vector<128x256xf32>
    %23 = tpu.matmul %3, %22, %cst_17 {dimension_numbers = #tpu.dot_dimension_numbers<[1], [0], [0], [1], [0, 0, 1, 1], [], []>} : vector<128x64xbf16>, vector<64x256xbf16>, vector<128x256xf32> -> vector<128x256xf32>
    %24 = arith.truncf %19 : vector<64x256xf32> to vector<64x256xbf16>
    %cst_18 = arith.constant dense<0.000000e+00> : vector<128x256xf32>
    %25 = tpu.matmul %3, %24, %cst_18 {dimension_numbers = #tpu.dot_dimension_numbers<[1], [0], [0], [1], [0, 0, 1, 1], [], []>} : vector<128x64xbf16>, vector<64x256xbf16>, vector<128x256xf32> -> vector<128x256xf32>
    %26 = vector.extract_strided_slice %23 {offsets = [0, 0], sizes = [64, 256], strides = [1, 1]} : vector<128x256xf32> to vector<64x256xf32>
    %27 = vector.extract_strided_slice %25 {offsets = [0, 0], sizes = [64, 256], strides = [1, 1]} : vector<128x256xf32> to vector<64x256xf32>
    %28 = vector.extract_strided_slice %23 {offsets = [64, 0], sizes = [64, 256], strides = [1, 1]} : vector<128x256xf32> to vector<64x256xf32>
    %29 = vector.broadcast %8 : vector<64x1xf32> to vector<64x256xf32>
    %30 = arith.addf %28, %29 : vector<64x256xf32>
    %cst_19 = arith.constant 0.000000e+00 : f32
    %31 = vector.broadcast %cst_19 : f32 to vector<64x256xf32>
    %32 = arith.maximumf %30, %31 : vector<64x256xf32>
    %33 = vector.extract_strided_slice %25 {offsets = [64, 0], sizes = [64, 256], strides = [1, 1]} : vector<128x256xf32> to vector<64x256xf32>
    %34 = vector.broadcast %8 : vector<64x1xf32> to vector<64x256xf32>
    %35 = arith.addf %33, %34 : vector<64x256xf32>
    %cst_20 = arith.constant 0.000000e+00 : f32
    %36 = vector.broadcast %cst_20 : f32 to vector<64x256xf32>
    %37 = arith.maximumf %35, %36 : vector<64x256xf32>
    %38 = arith.truncf %17 : vector<64x256xf32> to vector<64x256xbf16>
    %cst_21 = arith.constant dense<0.000000e+00> : vector<64x256xf32>
    %39 = tpu.matmul %4, %38, %cst_21 {dimension_numbers = #tpu.dot_dimension_numbers<[1], [0], [0], [1], [0, 0, 1, 1], [], []>} : vector<64x64xbf16>, vector<64x256xbf16>, vector<64x256xf32> -> vector<64x256xf32>
    %40 = vector.broadcast %9 : vector<64x1xf32> to vector<64x256xf32>
    %41 = arith.addf %39, %40 : vector<64x256xf32>
    %42 = vector.extract_strided_slice %21 {offsets = [0, 0], sizes = [32, 256], strides = [1, 1]} : vector<64x256xf32> to vector<32x256xf32>
    %43 = vector.extract_strided_slice %26 {offsets = [0, 0], sizes = [32, 256], strides = [1, 1]} : vector<64x256xf32> to vector<32x256xf32>
    %44 = arith.mulf %42, %43 : vector<32x256xf32>
    %cst_22 = arith.constant dense<0.000000e+00> : vector<256xf32>
    %45 = vector.multi_reduction <add>, %44, %cst_22 [0] : vector<32x256xf32> to vector<256xf32>
    %46 = vector.shape_cast %45 : vector<256xf32> to vector<1x256xf32>
    %cst_23 = arith.constant 0.176776692 : f32
    %47 = vector.broadcast %cst_23 : f32 to vector<1x256xf32>
    %48 = arith.mulf %46, %47 : vector<1x256xf32>
    %49 = vector.extract_strided_slice %27 {offsets = [0, 0], sizes = [32, 256], strides = [1, 1]} : vector<64x256xf32> to vector<32x256xf32>
    %50 = arith.mulf %42, %49 : vector<32x256xf32>
    %cst_24 = arith.constant dense<0.000000e+00> : vector<256xf32>
    %51 = vector.multi_reduction <add>, %50, %cst_24 [0] : vector<32x256xf32> to vector<256xf32>
    %52 = vector.shape_cast %51 : vector<256xf32> to vector<1x256xf32>
    %cst_25 = arith.constant 0.176776692 : f32
    %53 = vector.broadcast %cst_25 : f32 to vector<1x256xf32>
    %54 = arith.mulf %52, %53 : vector<1x256xf32>
    %55 = arith.maximumf %48, %54 : vector<1x256xf32>
    %56 = arith.subf %48, %55 : vector<1x256xf32>
    %57 = math.exp %56 : vector<1x256xf32>
    %58 = arith.subf %54, %55 : vector<1x256xf32>
    %59 = math.exp %58 : vector<1x256xf32>
    %60 = arith.addf %57, %59 : vector<1x256xf32>
    %61 = tpu.reciprocal %60 {approx = true} : vector<1x256xf32> -> vector<1x256xf32>
    %62 = vector.extract_strided_slice %32 {offsets = [0, 0], sizes = [32, 256], strides = [1, 1]} : vector<64x256xf32> to vector<32x256xf32>
    %63 = arith.mulf %57, %61 : vector<1x256xf32>
    %64 = vector.broadcast %63 : vector<1x256xf32> to vector<32x256xf32>
    %65 = arith.mulf %62, %64 : vector<32x256xf32>
    %66 = vector.extract_strided_slice %37 {offsets = [0, 0], sizes = [32, 256], strides = [1, 1]} : vector<64x256xf32> to vector<32x256xf32>
    %67 = arith.mulf %59, %61 : vector<1x256xf32>
    %68 = vector.broadcast %67 : vector<1x256xf32> to vector<32x256xf32>
    %69 = arith.mulf %66, %68 : vector<32x256xf32>
    %70 = arith.addf %65, %69 : vector<32x256xf32>
    %71 = vector.extract_strided_slice %21 {offsets = [32, 0], sizes = [32, 256], strides = [1, 1]} : vector<64x256xf32> to vector<32x256xf32>
    %72 = vector.extract_strided_slice %26 {offsets = [32, 0], sizes = [32, 256], strides = [1, 1]} : vector<64x256xf32> to vector<32x256xf32>
    %73 = arith.mulf %71, %72 : vector<32x256xf32>
    %cst_26 = arith.constant dense<0.000000e+00> : vector<256xf32>
    %74 = vector.multi_reduction <add>, %73, %cst_26 [0] : vector<32x256xf32> to vector<256xf32>
    %75 = vector.shape_cast %74 : vector<256xf32> to vector<1x256xf32>
    %cst_27 = arith.constant 0.176776692 : f32
    %76 = vector.broadcast %cst_27 : f32 to vector<1x256xf32>
    %77 = arith.mulf %75, %76 : vector<1x256xf32>
    %78 = vector.extract_strided_slice %27 {offsets = [32, 0], sizes = [32, 256], strides = [1, 1]} : vector<64x256xf32> to vector<32x256xf32>
    %79 = arith.mulf %71, %78 : vector<32x256xf32>
    %cst_28 = arith.constant dense<0.000000e+00> : vector<256xf32>
    %80 = vector.multi_reduction <add>, %79, %cst_28 [0] : vector<32x256xf32> to vector<256xf32>
    %81 = vector.shape_cast %80 : vector<256xf32> to vector<1x256xf32>
    %cst_29 = arith.constant 0.176776692 : f32
    %82 = vector.broadcast %cst_29 : f32 to vector<1x256xf32>
    %83 = arith.mulf %81, %82 : vector<1x256xf32>
    %84 = arith.maximumf %77, %83 : vector<1x256xf32>
    %85 = arith.subf %77, %84 : vector<1x256xf32>
    %86 = math.exp %85 : vector<1x256xf32>
    %87 = arith.subf %83, %84 : vector<1x256xf32>
    %88 = math.exp %87 : vector<1x256xf32>
    %89 = arith.addf %86, %88 : vector<1x256xf32>
    %90 = tpu.reciprocal %89 {approx = true} : vector<1x256xf32> -> vector<1x256xf32>
    %91 = vector.extract_strided_slice %32 {offsets = [32, 0], sizes = [32, 256], strides = [1, 1]} : vector<64x256xf32> to vector<32x256xf32>
    %92 = arith.mulf %86, %90 : vector<1x256xf32>
    %93 = vector.broadcast %92 : vector<1x256xf32> to vector<32x256xf32>
    %94 = arith.mulf %91, %93 : vector<32x256xf32>
    %95 = vector.extract_strided_slice %37 {offsets = [32, 0], sizes = [32, 256], strides = [1, 1]} : vector<64x256xf32> to vector<32x256xf32>
    %96 = arith.mulf %88, %90 : vector<1x256xf32>
    %97 = vector.broadcast %96 : vector<1x256xf32> to vector<32x256xf32>
    %98 = arith.mulf %95, %97 : vector<32x256xf32>
    %99 = arith.addf %94, %98 : vector<32x256xf32>
    %100 = tpu.concatenate %70, %99 in 0 : vector<32x256xf32>, vector<32x256xf32> -> vector<64x256xf32>
    %101 = arith.truncf %100 : vector<64x256xf32> to vector<64x256xbf16>
    %cst_30 = arith.constant dense<0.000000e+00> : vector<64x256xf32>
    %102 = tpu.matmul %5, %101, %cst_30 {dimension_numbers = #tpu.dot_dimension_numbers<[1], [0], [0], [1], [0, 0, 1, 1], [], []>} : vector<64x64xbf16>, vector<64x256xbf16>, vector<64x256xf32> -> vector<64x256xf32>
    %103 = arith.addf %41, %102 : vector<64x256xf32>
    %cst_31 = arith.constant 0.000000e+00 : f32
    %104 = vector.broadcast %cst_31 : f32 to vector<64x256xf32>
    %105 = arith.maximumf %103, %104 : vector<64x256xf32>
    %106 = arith.truncf %105 : vector<64x256xf32> to vector<64x256xbf16>
    %cst_32 = arith.constant dense<0.000000e+00> : vector<8x256xf32>
    %107 = tpu.matmul %6, %106, %cst_32 {dimension_numbers = #tpu.dot_dimension_numbers<[1], [0], [0], [1], [0, 0, 1, 1], [], []>} : vector<8x64xbf16>, vector<64x256xbf16>, vector<8x256xf32> -> vector<8x256xf32>
    %108 = vector.extract_strided_slice %107 {offsets = [0, 0], sizes = [1, 256], strides = [1, 1]} : vector<8x256xf32> to vector<1x256xf32>
    %109 = vector.broadcast %10 : vector<1x1xf32> to vector<1x256xf32>
    %110 = arith.addf %108, %109 : vector<1x256xf32>
    %c0_33 = arith.constant 0 : index
    %c0_34 = arith.constant 0 : index
    %111 = vector.load %arg4[%c0_33, %c0_34] : memref<1x256xf32, #tpu.memory_space<vmem>>, vector<1x256xf32>
    tpu.vector_store %arg4[%c0_33, %c0_34], %110 {strides = array<i32>} : memref<1x256xf32, #tpu.memory_space<vmem>>, vector<1x256xf32>,
    return
  }
  func.func @transform_0(%arg0: i32) -> (i32, i32) {
    %c0_i32 = arith.constant 0 : i32
    %c0_i32_0 = arith.constant 0 : i32
    return %c0_i32, %arg0 : i32, i32
  }
  func.func @transform_1(%arg0: i32) -> (i32, i32) {
    %c0_i32 = arith.constant 0 : i32
    %c0_i32_0 = arith.constant 0 : i32
    %c0_i32_1 = arith.constant 0 : i32
    return %c0_i32, %c0_i32_0 : i32, i32
  }
  func.func @transform_2(%arg0: i32) -> (i32, i32) {
    %c0_i32 = arith.constant 0 : i32
    %c0_i32_0 = arith.constant 0 : i32
    %c0_i32_1 = arith.constant 0 : i32
    return %c0_i32, %c0_i32_0 : i32, i32
  }
  func.func @transform_3(%arg0: i32) -> (i32, i32) {
    %c0_i32 = arith.constant 0 : i32
    %c0_i32_0 = arith.constant 0 : i32
    return %c0_i32, %arg0 : i32, i32
  }
}

</mosaic_0001>

<bundles_post_ra>
// kernel: tpu_custom_call.1
= control target key start
LH: loop header
LB: loop body
LE: loop exit
PB: predicated region body
PF: predicated region fallthrough
CT: control target
= control target key end

     0   :  { %v1867_v7 = vmov 0   ;;  %vm326_vm0 = vcmask 523264   ;;  %s2496_s0 = inlined_call_operand.vmem [shape: f32[64,256], index: 0, kind: input, shape index: {}]   ;;  %s2497_s1 = inlined_call_operand.vmem [shape: bf16[520,64], index: 1, kind: input, shape index: {}]   ;;  %s2498_s2 = inlined_call_operand.vmem [shape: f32[321,1], index: 2, kind: input, shape index: {}]   ;;  %s2499_s3 = inlined_call_operand.hbm [shape: f32[1,256], index: 3, kind: output, shape index: {}]  }
   0x1   :  { %v17_v0 = vld [vmem:[%s2496_s0 + $0x8] sm:$0xff]  ;;  %v19_v1 = vld [vmem:[%s2496_s0 + $0x18] sm:$0xff]  ;;  %v16_v2 = vld [vmem:[%s2496_s0] sm:$0xff]  ;;  %395 = vmatprep.mubr.bf16.mxu0 %v1867_v7  ;;  %1785 = vset.pattern.permute.xlu0 %v1867_v7 }
   0x2   :  { %v139_v3 = vpack.c.bf16 %v19_v1, %v17_v0  ;;  %v18_v4 = vld [vmem:[%s2496_s0 + $0x10] sm:$0xff]  ;;  %v21_v5 = vld [vmem:[%s2496_s0 + $0x28] sm:$0xff]  ;;  %v23_v6 = vld [vmem:[%s2496_s0 + $0x38] sm:$0xff]  ;;  %1786 = vset.pattern.permute.xlu1 %v1867_v7  ;;  %636 = vmatprep.mubr.bf16.mxu1 %v1867_v7 }
   0x3   :  { %v138_v8 = vpack.c.bf16 %v18_v4, %v16_v2  ;;  %v141_v9 = vpack.c.bf16 %v23_v6, %v21_v5  ;;  %v20_v10 = vld [vmem:[%s2496_s0 + $0x20] sm:$0xff]  ;;  %v22_v11 = vld [vmem:[%s2496_s0 + $0x30] sm:$0xff]  ;;  %v25_v12 = vld [vmem:[%s2496_s0 + $0x48] sm:$0xff] }
   0x4   :  { %363 = vmatprep.subr.bf16.mxu0 %v139_v3  ;;  %v27_v13 = vld [vmem:[%s2496_s0 + $0x58] sm:$0xff]  ;;  %v140_v14 = vpack.c.bf16 %v22_v11, %v20_v10  ;;  %v24_v15 = vld [vmem:[%s2496_s0 + $0x40] sm:$0xff]  ;;  %v26_v16 = vld [vmem:[%s2496_s0 + $0x50] sm:$0xff] }
   0x5   :  { %364 = vmatpush1.bf16.msra.mxu0 %v138_v8  ;;  %v143_v17 = vpack.c.bf16 %v27_v13, %v25_v12  ;;  %v29_v18 = vld [vmem:[%s2496_s0 + $0x68] sm:$0xff]  ;;  %v31_v19 = vld [vmem:[%s2496_s0 + $0x78] sm:$0xff]  ;;  %v142_v20 = vpack.c.bf16 %v26_v16, %v24_v15  ;;  %v28_v21 = vld [vmem:[%s2496_s0 + $0x60] sm:$0xff] }
   0x6   :  { %365 = vmatprep.subr.bf16.mxu0 %v141_v9  ;;  %v145_v22 = vpack.c.bf16 %v31_v19, %v29_v18  ;;  %v30_v23 = vld [vmem:[%s2496_s0 + $0x70] sm:$0xff]  ;;  %v105_v25 = vld [vmem:[%s2498_s2 + $0x40] sm:$0xff]  ;;  %v106_v27 = vld [vmem:[%s2498_s2 + $0x48] sm:$0xff] }
   0x7   :  { %v144_v24 = vpack.c.bf16 %v30_v23, %v28_v21  ;;  %v107_v26 = vld [vmem:[%s2498_s2 + $0x50] sm:$0xff]  ;;  %188 = vperm.xlu0 %1785, %v105_v25   ;;  %v1787_v28 = vld [vmem:[%s2497_s1] sm:$0xff]   ;;  %v108_v29 = vld [vmem:[%s2498_s2 + $0x58] sm:$0xff] }
   0x8   :  { %198 = vperm.xlu1 %1786, %v107_v26   ;;  %v109_v30 = vld [vmem:[%s2498_s2 + $0x60] sm:$0xff]  ;;  %v110_v31 = vld [vmem:[%s2498_s2 + $0x68] sm:$0xff]  ;;  %v111_v32 = vld [vmem:[%s2498_s2 + $0x70] sm:$0xff] }
   0x9   :  { %366 = vmatpush1.bf16.msra.mxu0 %v140_v14  ;;  %v1788_v33 = vld [vmem:[%s2497_s1 + $0x8] sm:$0xff]   ;;  %v112_v34 = vld [vmem:[%s2498_s2 + $0x78] sm:$0xff]  ;;  %v97_v35 = vld [vmem:[%s2498_s2] sm:$0xff] }
   0xa   :  { %367 = vmatprep.subr.bf16.mxu0 %v143_v17  ;;  %v98_v36 = vld [vmem:[%s2498_s2 + $0x8] sm:$0xff]  ;;  %v1789_v37 = vld [vmem:[%s2497_s1 + $0x10] sm:$0xff]   ;;  %v113_v38 = vld [vmem:[%s2498_s2 + $0x80] sm:$0xff] }
   0xb   :  { %193 = vperm.xlu0 %1785, %v106_v27   ;;  %v114_v39 = vld [vmem:[%s2498_s2 + $0x88] sm:$0xff]  ;;  %v99_v40 = vld [vmem:[%s2498_s2 + $0x10] sm:$0xff]  ;;  %v100_v41 = vld [vmem:[%s2498_s2 + $0x18] sm:$0xff] }
   0xc   :  { %203 = vperm.xlu1 %1786, %v108_v29   ;;  %v115_v42 = vld [vmem:[%s2498_s2 + $0x90] sm:$0xff]  ;;  %v1790_v43 = vld [vmem:[%s2497_s1 + $0x18] sm:$0xff]   ;;  %v101_v45 = vld [vmem:[%s2498_s2 + $0x20] sm:$0xff] }
   0xd   :  { %368 = vmatpush1.bf16.msra.mxu0 %v142_v20  ;;  %v116_v44 = vld [vmem:[%s2498_s2 + $0x98] sm:$0xff]  ;;  %v102_v46 = vld [vmem:[%s2498_s2 + $0x28] sm:$0xff] }
   0xe   :  { %369 = vmatprep.subr.bf16.mxu0 %v145_v22 }
   0xf   :  { %208 = vperm.xlu0 %1785, %v109_v30  }
  0x10   :  { %213 = vperm.xlu1 %1786, %v110_v31  }
  0x11   :  { %370 = vmatpush1.bf16.msra.mxu0 %v144_v24 }
  0x13   :  { %218 = vperm.xlu0 %1785, %v111_v32  }
  0x14   :  { %1689 = vmatmul.mubr.msk.bf16.vlgmr.msra.gmra.mrb[0].mxu0 %vm326_vm0, %v1787_v28  ;;  %223 = vperm.xlu1 %1786, %v112_v34  }
  0x15   :  { %405 = vmatprep.mubr.bf16.mxu0 %v1867_v7 }
  0x17   :  { %148 = vperm.xlu0 %1785, %v97_v35  }
  0x18   :  { %153 = vperm.xlu1 %1786, %v98_v36  }
  0x1b   :  { %228 = vperm.xlu0 %1785, %v113_v38  }
  0x1c   :  { %1690 = vmatmul.mubr.msk.bf16.gmra.mrb[4].mxu0 %vm326_vm0, %v1788_v33  ;;  %233 = vperm.xlu1 %1786, %v114_v39  }
  0x1d   :  { %415 = vmatprep.mubr.bf16.mxu0 %v1867_v7 }
  0x1f   :  { %158 = vperm.xlu0 %1785, %v99_v40  }
  0x20   :  { %163 = vperm.xlu1 %1786, %v100_v41  }
  0x23   :  { %238 = vperm.xlu0 %1785, %v115_v42  }
  0x24   :  { %1691 = vmatmul.mubr.msk.bf16.gmra.mrb[8].mxu0 %vm326_vm0, %v1789_v37  ;;  %243 = vperm.xlu1 %1786, %v116_v44  }
  0x25   :  { %425 = vmatprep.mubr.bf16.mxu0 %v1867_v7 }
  0x2c   :  { %1692 = vmatmul.mubr.msk.bf16.gmra.mrb[12].mxu0 %vm326_vm0, %v1790_v43 }
  0x2d   :  { %435 = vmatprep.mubr.bf16.mxu0 %v1867_v7 }
  0x2e   :  { %8 = vsyncpa [#allocation3], 0  ;;  %168 = vperm.xlu0 %1785, %v101_v45   ;;  %173 = vperm.xlu1 %1786, %v102_v46   ;;  %v117_v47 = vld [vmem:[%s2498_s2 + $0xa0] sm:$0xff]  ;;  %v118_v49 = vld [vmem:[%s2498_s2 + $0xa8] sm:$0xff]  ;;  %s1869_s23 = smov [#allocation2]  }
  0x2f   :  { %v1791_v48 = vld [vmem:[%s2497_s1 + $0x20] sm:$0xff]   ;;  %v103_v50 = vld [vmem:[%s2498_s2 + $0x30] sm:$0xff]  ;;  %v104_v51 = vld [vmem:[%s2498_s2 + $0x38] sm:$0xff]  ;;  %s1669_s24 = sshll.u32 %s1869_s23, 4  ;;  %s1670_s24 = int_to_ptr.vmem [resolvable:$true] %s1669_s24 }
  0x30   :  { %v119_v52 = vld [vmem:[%s2498_s2 + $0xb0] sm:$0xff]  ;;  %v1792_v53 = vld [vmem:[%s2497_s1 + $0x28] sm:$0xff]   ;;  %v120_v54 = vld [vmem:[%s2498_s2 + $0xb8] sm:$0xff]  ;;  %p1848_p1 = scmp.lt.s32.totalorder %s1670_s24, %s1670_s24 }
  0x31   :  { %v121_v55 = vld [vmem:[%s2498_s2 + $0xc0] sm:$0xff]  ;;  %v122_v56 = vld [vmem:[%s2498_s2 + $0xc8] sm:$0xff]  ;;  %v123_v57 = vld [vmem:[%s2498_s2 + $0xd0] sm:$0xff] }
  0x32   :  { %248 = vperm.xlu0 %1785, %v117_v47   ;;  %253 = vperm.xlu1 %1786, %v118_v49   ;;  %v1793_v58 = vld [vmem:[%s2497_s1 + $0x30] sm:$0xff]   ;;  %v124_v59 = vld [vmem:[%s2498_s2 + $0xd8] sm:$0xff]  ;;  %v125_v60 = vld [vmem:[%s2498_s2 + $0xe0] sm:$0xff] }
  0x33   :  { %v126_v61 = vld [vmem:[%s2498_s2 + $0xe8] sm:$0xff]  ;;  %v127_v62 = vld [vmem:[%s2498_s2 + $0xf0] sm:$0xff]  ;;  %v1794_v63 = vld [vmem:[%s2497_s1 + $0x38] sm:$0xff]  }
  0x34   :  { %1693 = vmatmul.mubr.msk.bf16.gmra.mrb[16].mxu0 %vm326_vm0, %v1791_v48  ;;  %v128_v0 = vld [vmem:[%s2498_s2 + $0xf8] sm:$0xff]  ;;  %v129_v1 = vld [vmem:[%s2498_s2 + $0x100] sm:$0xff]  ;;  %v130_v2 = vld [vmem:[%s2498_s2 + $0x108] sm:$0xff] }
  0x35   :  { %445 = vmatprep.mubr.bf16.mxu0 %v1867_v7  ;;  %v131_v3 = vld [vmem:[%s2498_s2 + $0x110] sm:$0xff]  ;;  %v1795_v4 = vld [vmem:[%s2497_s1 + $0x40] sm:$0xff]   ;;  %v132_v5 = vld [vmem:[%s2498_s2 + $0x118] sm:$0xff] }
  0x36   :  { %178 = vperm.xlu0 %1785, %v103_v50   ;;  %183 = vperm.xlu1 %1786, %v104_v51   ;;  %v133_v6 = vld [vmem:[%s2498_s2 + $0x120] sm:$0xff]  ;;  %v134_v8 = vld [vmem:[%s2498_s2 + $0x128] sm:$0xff]  ;;  %v135_v9 = vld [vmem:[%s2498_s2 + $0x130] sm:$0xff] }
  0x37   :  { %v1796_v10 = vld [vmem:[%s2497_s1 + $0x48] sm:$0xff]   ;;  %v136_v11 = vld [vmem:[%s2498_s2 + $0x138] sm:$0xff]  ;;  %v137_v12 = vld [vmem:[%s2498_s2 + $0x140] sm:$0x1] }
  0x38   :  { %v1797_v13 = vld [vmem:[%s2497_s1 + $0x50] sm:$0xff]   ;;  %v1798_v14 = vld [vmem:[%s2497_s1 + $0x58] sm:$0xff]  }
  0x3a   :  { %258 = vperm.xlu0 %1785, %v119_v52   ;;  %263 = vperm.xlu1 %1786, %v120_v54  }
  0x3c   :  { %1694 = vmatmul.mubr.msk.bf16.gmra.mrb[20].mxu0 %vm326_vm0, %v1792_v53 }
  0x3d   :  { %455 = vmatprep.mubr.bf16.mxu0 %v1867_v7 }
  0x3e   :  { %985 = vperm.xlu0 %1785, %v121_v55   ;;  %990 = vperm.xlu1 %1786, %v122_v56  }
  0x42   :  { %995 = vperm.xlu0 %1785, %v123_v57   ;;  %1000 = vperm.xlu1 %1786, %v124_v59  }
  0x44   :  { %1695 = vmatmul.mubr.msk.bf16.gmra.mrb[24].mxu0 %vm326_vm0, %v1793_v58 }
  0x45   :  { %465 = vmatprep.mubr.bf16.mxu0 %v1867_v7 }
  0x46   :  { %1005 = vperm.xlu0 %1785, %v125_v60   ;;  %1010 = vperm.xlu1 %1786, %v126_v61  }
  0x4a   :  { %1015 = vperm.xlu0 %1785, %v127_v62   ;;  %1020 = vperm.xlu1 %1786, %v128_v0  }
  0x4c   :  { %1696 = vmatmul.mubr.msk.bf16.gmra.mrb[28].mxu0 %vm326_vm0, %v1794_v63 }
  0x4d   :  { %475 = vmatprep.mubr.bf16.mxu0 %v1867_v7 }
  0x4e   :  { %1089 = vperm.xlu0 %1785, %v129_v1   ;;  %1094 = vperm.xlu1 %1786, %v130_v2  }
  0x52   :  { %1099 = vperm.xlu0 %1785, %v131_v3   ;;  %1104 = vperm.xlu1 %1786, %v132_v5  }
  0x54   :  { %1697 = vmatmul.mubr.msk.bf16.gmra.mrb[32].mxu0 %vm326_vm0, %v1795_v4 }
  0x55   :  { %485 = vmatprep.mubr.bf16.mxu0 %v1867_v7 }
  0x56   :  { %1109 = vperm.xlu0 %1785, %v133_v6   ;;  %1114 = vperm.xlu1 %1786, %v134_v8  }
  0x5a   :  { %1119 = vperm.xlu0 %1785, %v135_v9   ;;  %1124 = vperm.xlu1 %1786, %v136_v11  }
  0x5c   :  { %1698 = vmatmul.mubr.msk.bf16.gmra.mrb[36].mxu0 %vm326_vm0, %v1796_v10 }
  0x5d   :  { %495 = vmatprep.mubr.bf16.mxu0 %v1867_v7 }
  0x5e   :  { %1635 = vperm.xlu0 %1785, %v137_v12  }
  0x64   :  { %1699 = vmatmul.mubr.msk.bf16.gmra.mrb[40].mxu0 %vm326_vm0, %v1797_v13 }
  0x65   :  { %505 = vmatprep.mubr.bf16.mxu0 %v1867_v7 }
  0x6c   :  { %1700 = vmatmul.mubr.msk.bf16.gmra.mrb[44].mxu0 %vm326_vm0, %v1798_v14 }
  0x6d   :  { %902 = vmatprep.mubr.bf16.mxu0 %v1867_v7 }
  0x86   :  { %v2125_v15 = vpop.permute.xlu0 %188 }
  0x87   :  { %v2127_v16 = vpop.permute.xlu1 %198 }
  0x8a   :  { %v2129_v17 = vpop.permute.xlu0 %193 }
  0x8b   :  { %v2131_v18 = vpop.permute.xlu1 %203 }
  0x8e   :  { %v2133_v19 = vpop.permute.xlu0 %208 }
  0x8f   :  { %v2135_v20 = vpop.permute.xlu1 %213 }
  0x92   :  { %v2137_v21 = vpop.permute.xlu0 %218 }
  0x93   :  { %v2139_v22 = vpop.permute.xlu1 %223 }
  0x96   :  { %v149_v23 = vpop.permute.xlu0 %148 }
  0x97   :  { %v154_v24 = vpop.permute.xlu1 %153 }
  0x9a   :  { %v2141_v25 = vpop.permute.xlu0 %228 }
  0x9b   :  { %v2143_v26 = vpop.permute.xlu1 %233 }
  0x9e   :  { %v159_v27 = vpop.permute.xlu0 %158 }
  0x9f   :  { %v164_v31 = vpop.permute.xlu1 %163 }
  0xa2   :  { %v2145_v39 = vpop.permute.xlu0 %238 }
  0xa3   :  { %v2149_v43 = vpop.permute.xlu1 %243 }
  0xad   :  { %v169_v52 = vpop.permute.xlu0 %168  ;;  %v174_v56 = vpop.permute.xlu1 %173 }
  0xb1   :  { %v2157_v0 = vpop.permute.xlu0 %248  ;;  %v2159_v5 = vpop.permute.xlu1 %253 }
  0xb5   :  { %v179_v13 = vpop.permute.xlu0 %178 }
  0xe7   :  { %v397_v28 = vpop.f32.mrb[0].mxu0 }
  0xe8   :  { %v398_v29 = vadd.f32 %v397_v28, %v149_v23  ;;  %v399_v30 = vpop.f32.mrb[1].mxu0  ;;  %v184_v28 = vpop.permute.xlu1 %183 }
  0xe9   :  { %v400_v32 = vadd.f32 %v399_v30, %v149_v23  ;;  %v401_v33 = vpop.f32.mrb[2].mxu0 }
  0xea   :  { %v402_v34 = vadd.f32 %v401_v33, %v154_v24  ;;  %v403_v35 = vpop.f32.mrb[3].mxu0  ;;  %v516_v37 = vmax.f32 %v398_v29, 0.0 }
  0xeb   :  { %v404_v36 = vadd.f32 %v403_v35, %v154_v24  ;;  %v517_v40 = vmax.f32 %v400_v32, 0.0 }
  0xec   :  { %v518_v38 = vmax.f32 %v402_v34, 0.0 }
  0xed   :  { %v519_v41 = vmax.f32 %v404_v36, 0.0 }
  0xee   :  { %v2147_v42 = vpack.c.bf16 %v518_v38, %v516_v37 }
  0xef   :  { %v2151_v44 = vpack.c.bf16 %v519_v41, %v517_v40  ;;  %v407_v45 = vpop.f32.mrb[4].mxu0 }
  0xf0   :  { %v408_v46 = vadd.f32 %v407_v45, %v159_v27  ;;  %v409_v47 = vpop.f32.mrb[5].mxu0 }
  0xf1   :  { %v410_v48 = vadd.f32 %v409_v47, %v159_v27  ;;  %v411_v49 = vpop.f32.mrb[6].mxu0 }
  0xf2   :  { %v412_v50 = vadd.f32 %v411_v49, %v164_v31  ;;  %v413_v51 = vpop.f32.mrb[7].mxu0  ;;  %v520_v54 = vmax.f32 %v408_v46, 0.0 }
  0xf3   :  { %v414_v53 = vadd.f32 %v413_v51, %v164_v31  ;;  %v521_v57 = vmax.f32 %v410_v48, 0.0 }
  0xf4   :  { %v522_v55 = vmax.f32 %v412_v50, 0.0 }
  0xf5   :  { %v523_v58 = vmax.f32 %v414_v53, 0.0 }
  0xf6   :  { %v2153_v59 = vpack.c.bf16 %v522_v55, %v520_v54 }
  0xf7   :  { %v2155_v60 = vpack.c.bf16 %v523_v58, %v521_v57  ;;  %v417_v61 = vpop.f32.mrb[8].mxu0 }
  0xf8   :  { %v418_v62 = vadd.f32 %v417_v61, %v169_v52  ;;  %v419_v63 = vpop.f32.mrb[9].mxu0 }
  0xf9   :  { %v420_v1 = vadd.f32 %v419_v63, %v169_v52  ;;  %v421_v2 = vpop.f32.mrb[10].mxu0 }
  0xfa   :  { %v422_v3 = vadd.f32 %v421_v2, %v174_v56  ;;  %v423_v4 = vpop.f32.mrb[11].mxu0  ;;  %v524_v8 = vmax.f32 %v418_v62, 0.0 }
  0xfb   :  { %v424_v6 = vadd.f32 %v423_v4, %v174_v56  ;;  %v525_v10 = vmax.f32 %v420_v1, 0.0 }
  0xfc   :  { %v526_v9 = vmax.f32 %v422_v3, 0.0 }
  0xfd   :  { %v527_v11 = vmax.f32 %v424_v6, 0.0 }
  0xfe   :  { %v2161_v12 = vpack.c.bf16 %v526_v9, %v524_v8 }
  0xff   :  { %v2163_v14 = vpack.c.bf16 %v527_v11, %v525_v10  ;;  %v427_v23 = vpop.f32.mrb[12].mxu0 }
 0x100   :  { %v428_v24 = vadd.f32 %v427_v23, %v179_v13  ;;  %v429_v27 = vpop.f32.mrb[13].mxu0 }
 0x101   :  { %v430_v29 = vadd.f32 %v429_v27, %v179_v13  ;;  %v431_v30 = vpop.f32.mrb[14].mxu0 }
 0x102   :  { %v432_v31 = vadd.f32 %v431_v30, %v184_v28  ;;  %v433_v32 = vpop.f32.mrb[15].mxu0  ;;  %v528_v34 = vmax.f32 %v428_v24, 0.0 }
 0x103   :  { %v434_v33 = vadd.f32 %v433_v32, %v184_v28  ;;  %v529_v36 = vmax.f32 %v430_v29, 0.0 }
 0x104   :  { %v530_v35 = vmax.f32 %v432_v31, 0.0 }
 0x105   :  { %v531_v37 = vmax.f32 %v434_v33, 0.0 }
 0x106   :  { %v2165_v38 = vpack.c.bf16 %v530_v35, %v528_v34 }
 0x107   :  { %v2167_v40 = vpack.c.bf16 %v531_v37, %v529_v36  ;;  %v437_v41 = vpop.f32.mrb[16].mxu0 }
 0x108   :  { %v438_v45 = vadd.f32 %v437_v41, %v2125_v15  ;;  %v439_v46 = vpop.f32.mrb[17].mxu0 }
 0x109   :  { %v440_v47 = vadd.f32 %v439_v46, %v2125_v15  ;;  %v441_v48 = vpop.f32.mrb[18].mxu0 }
 0x10a   :  { %v442_v49 = vadd.f32 %v441_v48, %v2129_v17  ;;  %v443_v50 = vpop.f32.mrb[19].mxu0  ;;  %v532_v52 = vmax.f32 %v438_v45, 0.0 }
 0x10b   :  { %v444_v51 = vadd.f32 %v443_v50, %v2129_v17  ;;  %v533_v54 = vmax.f32 %v440_v47, 0.0 }
 0x10c   :  { %v534_v53 = vmax.f32 %v442_v49, 0.0 }
 0x10d   :  { %v535_v55 = vmax.f32 %v444_v51, 0.0 }
 0x10e   :  { %v2173_v56 = vpack.c.bf16 %v534_v53, %v532_v52 }
 0x10f   :  { %v447_v57 = vpop.f32.mrb[20].mxu0  ;;  %v2175_v58 = vpack.c.bf16 %v535_v55, %v533_v54 }
 0x110   :  { %v448_v61 = vadd.f32 %v447_v57, %v2127_v16  ;;  %v449_v62 = vpop.f32.mrb[21].mxu0 }
 0x111   :  { %v450_v15 = vadd.f32 %v449_v62, %v2127_v16  ;;  %v451_v63 = vpop.f32.mrb[22].mxu0  ;;  %604 = vmatprep.subr.bf16.mxu1 %v2175_v58 }
 0x112   :  { %v452_v1 = vadd.f32 %v451_v63, %v2131_v18  ;;  %v453_v17 = vpop.f32.mrb[23].mxu0  ;;  %605 = vmatpush1.bf16.msra.mxu1 %v2173_v56  ;;  %v536_v3 = vmax.f32 %v448_v61, 0.0 }
 0x113   :  { %v454_v2 = vadd.f32 %v453_v17, %v2131_v18  ;;  %v537_v6 = vmax.f32 %v450_v15, 0.0 }
 0x114   :  { %v538_v4 = vmax.f32 %v452_v1, 0.0 }
 0x115   :  { %v539_v8 = vmax.f32 %v454_v2, 0.0 }
 0x116   :  { %v2183_v9 = vpack.c.bf16 %v538_v4, %v536_v3 }
 0x117   :  { %v2185_v10 = vpack.c.bf16 %v539_v8, %v537_v6  ;;  %v457_v11 = vpop.f32.mrb[24].mxu0 }
 0x118   :  { %v458_v16 = vadd.f32 %v457_v11, %v2133_v19  ;;  %v459_v13 = vpop.f32.mrb[25].mxu0  ;;  %v1800_v11 = vld [vmem:[%s2497_s1 + $0x68] sm:$0xff]  }
 0x119   :  { %v460_v23 = vadd.f32 %v459_v13, %v2133_v19  ;;  %v461_v24 = vpop.f32.mrb[26].mxu0  ;;  %606 = vmatprep.subr.bf16.mxu1 %v2185_v10 }
 0x11a   :  { %v462_v27 = vadd.f32 %v461_v24, %v2135_v20  ;;  %v463_v18 = vpop.f32.mrb[27].mxu0  ;;  %607 = vmatpush1.bf16.msra.mxu1 %v2183_v9  ;;  %v540_v29 = vmax.f32 %v458_v16, 0.0 }
 0x11b   :  { %v464_v28 = vadd.f32 %v463_v18, %v2135_v20  ;;  %v541_v31 = vmax.f32 %v460_v23, 0.0 }
 0x11c   :  { %v542_v30 = vmax.f32 %v462_v27, 0.0 }
 0x11d   :  { %v543_v32 = vmax.f32 %v464_v28, 0.0 }
 0x11e   :  { %v2193_v33 = vpack.c.bf16 %v542_v30, %v540_v29  ;;  %v1801_v30 = vld [vmem:[%s2497_s1 + $0x70] sm:$0xff]  }
 0x11f   :  { %v2195_v34 = vpack.c.bf16 %v543_v32, %v541_v31  ;;  %v467_v35 = vpop.f32.mrb[28].mxu0 }
 0x120   :  { %v468_v19 = vadd.f32 %v467_v35, %v2137_v21  ;;  %v469_v36 = vpop.f32.mrb[29].mxu0 }
 0x121   :  { %v470_v37 = vadd.f32 %v469_v36, %v2137_v21  ;;  %v471_v41 = vpop.f32.mrb[30].mxu0  ;;  %608 = vmatprep.subr.bf16.mxu1 %v2195_v34 }
 0x122   :  { %v472_v45 = vadd.f32 %v471_v41, %v2139_v22  ;;  %v473_v20 = vpop.f32.mrb[31].mxu0  ;;  %609 = vmatpush1.bf16.msra.mxu1 %v2193_v33  ;;  %v544_v47 = vmax.f32 %v468_v19, 0.0 }
 0x123   :  { %v474_v46 = vadd.f32 %v473_v20, %v2139_v22  ;;  %v545_v49 = vmax.f32 %v470_v37, 0.0  ;;  %v1799_v22 = vld [vmem:[%s2497_s1 + $0x60] sm:$0xff]   ;;  %v259_v37 = vpop.permute.xlu0 %258 }
 0x124   :  { %v546_v48 = vmax.f32 %v472_v45, 0.0 }
 0x125   :  { %v547_v50 = vmax.f32 %v474_v46, 0.0 }
 0x126   :  { %v2203_v51 = vpack.c.bf16 %v546_v48, %v544_v47 }
 0x127   :  { %v2205_v52 = vpack.c.bf16 %v547_v50, %v545_v49  ;;  %v477_v53 = vpop.f32.mrb[32].mxu0 }
 0x128   :  { %v478_v21 = vadd.f32 %v477_v53, %v2141_v25  ;;  %v479_v54 = vpop.f32.mrb[33].mxu0 }
 0x129   :  { %v480_v55 = vadd.f32 %v479_v54, %v2141_v25  ;;  %v481_v57 = vpop.f32.mrb[34].mxu0  ;;  %610 = vmatprep.subr.bf16.mxu1 %v2205_v52 }
 0x12a   :  { %v482_v61 = vadd.f32 %v481_v57, %v2143_v26  ;;  %v483_v62 = vpop.f32.mrb[35].mxu0  ;;  %611 = vmatpush1.bf16.msra.mxu1 %v2203_v51  ;;  %v548_v63 = vmax.f32 %v478_v21, 0.0 }
 0x12b   :  { %v484_v15 = vadd.f32 %v483_v62, %v2143_v26  ;;  %749 = vmatprep.subr.bf16.mxu1 %v2151_v44  ;;  %v549_v17 = vmax.f32 %v480_v55, 0.0  ;;  %v1804_v62 = vld [vmem:[%s2497_s1 + $0x88] sm:$0xff]  }
 0x12c   :  { %v550_v1 = vmax.f32 %v482_v61, 0.0  ;;  %v1803_v61 = vld [vmem:[%s2497_s1 + $0x80] sm:$0xff]  }
 0x12d   :  { %v551_v25 = vmax.f32 %v484_v15, 0.0  ;;  %1705 = vmatmul.mubr.msk.bf16.vlgmr.msra.gmra.mrb[0].mxu1 %vm326_vm0, %v1799_v22  ;;  %v1812_v15 = vld [vmem:[%s2497_s1 + $0xc8] sm:$0xff]  }
 0x12e   :  { %v862_v2 = vpack.c.bf16 %v550_v1, %v548_v63  ;;  %750 = vmatpush1.bf16.msra.mxu1 %v2147_v42  ;;  %646 = vmatprep.mubr.bf16.mxu1 %v1867_v7  ;;  %v1813_v63 = vld [vmem:[%s2497_s1 + $0xd0] sm:$0xff]   ;;  %v1814_v1 = vld [vmem:[%s2497_s1 + $0xd8] sm:$0xff]  }
 0x12f   :  { %v863_v3 = vpack.c.bf16 %v551_v25, %v549_v17  ;;  %v487_v4 = vpop.f32.mrb[36].mxu0  ;;  %751 = vmatprep.subr.bf16.mxu1 %v2155_v60 }
 0x130   :  { %v488_v6 = vadd.f32 %v487_v4, %v2145_v39  ;;  %v489_v26 = vpop.f32.mrb[37].mxu0 }
 0x131   :  { %v490_v44 = vadd.f32 %v489_v26, %v2145_v39  ;;  %v491_v8 = vpop.f32.mrb[38].mxu0  ;;  %870 = vmatprep.subr.bf16.mxu0 %v863_v3 }
 0x132   :  { %v492_v16 = vadd.f32 %v491_v8, %v2149_v43  ;;  %v493_v42 = vpop.f32.mrb[39].mxu0  ;;  %752 = vmatpush1.bf16.msra.mxu1 %v2153_v59  ;;  %871 = vmatpush1.bf16.msra.mxu0 %v862_v2  ;;  %v552_v60 = vmax.f32 %v488_v6, 0.0 }
 0x133   :  { %v494_v13 = vadd.f32 %v493_v42, %v2149_v43  ;;  %753 = vmatprep.subr.bf16.mxu1 %v2163_v14  ;;  %v553_v24 = vmax.f32 %v490_v44, 0.0 }
 0x134   :  { %v554_v23 = vmax.f32 %v492_v16, 0.0 }
 0x135   :  { %v555_v39 = vmax.f32 %v494_v13, 0.0  ;;  %1706 = vmatmul.mubr.msk.bf16.gmra.mrb[4].mxu1 %vm326_vm0, %v1800_v11 }
 0x136   :  { %v864_v27 = vpack.c.bf16 %v554_v23, %v552_v60  ;;  %754 = vmatpush1.bf16.msra.mxu1 %v2161_v12  ;;  %656 = vmatprep.mubr.bf16.mxu1 %v1867_v7 }
 0x137   :  { %v865_v18 = vpack.c.bf16 %v555_v39, %v553_v24  ;;  %v497_v28 = vpop.f32.mrb[40].mxu0  ;;  %755 = vmatprep.subr.bf16.mxu1 %v2167_v40 }
 0x138   :  { %v498_v59 = vadd.f32 %v497_v28, %v2157_v0  ;;  %v499_v43 = vpop.f32.mrb[41].mxu0 }
 0x139   :  { %v500_v14 = vadd.f32 %v499_v43, %v2157_v0  ;;  %v501_v29 = vpop.f32.mrb[42].mxu0  ;;  %872 = vmatprep.subr.bf16.mxu0 %v865_v18 }
 0x13a   :  { %v502_v31 = vadd.f32 %v501_v29, %v2159_v5  ;;  %v503_v12 = vpop.f32.mrb[43].mxu0  ;;  %756 = vmatpush1.bf16.msra.mxu1 %v2165_v38  ;;  %873 = vmatpush1.bf16.msra.mxu0 %v864_v27  ;;  %v556_v40 = vmax.f32 %v498_v59, 0.0  ;;  %v264_v38 = vpop.permute.xlu1 %263 }
 0x13b   :  { %v504_v32 = vadd.f32 %v503_v12, %v2159_v5  ;;  %1159 = vmatprep.subr.bf16.mxu1 %v2175_v58  ;;  %v557_v19 = vmax.f32 %v500_v14, 0.0  ;;  %v1802_v5 = vld [vmem:[%s2497_s1 + $0x78] sm:$0xff]  }
 0x13c   :  { %v558_v35 = vmax.f32 %v502_v31, 0.0 }
 0x13d   :  { %v559_v0 = vmax.f32 %v504_v32, 0.0  ;;  %1707 = vmatmul.mubr.msk.bf16.gmra.mrb[8].mxu1 %vm326_vm0, %v1801_v30 }
 0x13e   :  { %v866_v36 = vpack.c.bf16 %v558_v35, %v556_v40  ;;  %666 = vmatprep.mubr.bf16.mxu1 %v1867_v7 }
 0x13f   :  { %v867_v41 = vpack.c.bf16 %v559_v0, %v557_v19  ;;  %v507_v45 = vpop.f32.mrb[44].mxu0 }
 0x140   :  { %v508_v20 = vadd.f32 %v507_v45, %v259_v37  ;;  %v509_v46 = vpop.f32.mrb[45].mxu0 }
 0x141   :  { %v510_v47 = vadd.f32 %v509_v46, %v259_v37  ;;  %v511_v48 = vpop.f32.mrb[46].mxu0  ;;  %874 = vmatprep.subr.bf16.mxu0 %v867_v41 }
 0x142   :  { %v512_v58 = vadd.f32 %v511_v48, %v264_v38  ;;  %v513_v49 = vpop.f32.mrb[47].mxu0  ;;  %875 = vmatpush1.bf16.msra.mxu0 %v866_v36  ;;  %v560_v53 = vmax.f32 %v508_v20, 0.0 }
 0x143   :  { %v514_v50 = vadd.f32 %v513_v49, %v264_v38  ;;  %v561_v54 = vmax.f32 %v510_v47, 0.0 }
 0x144   :  { %v562_v21 = vmax.f32 %v512_v58, 0.0 }
 0x145   :  { %v563_v55 = vmax.f32 %v514_v50, 0.0  ;;  %1708 = vmatmul.mubr.msk.bf16.gmra.mrb[12].mxu1 %vm326_vm0, %v1802_v5 }
 0x146   :  { %v868_v57 = vpack.c.bf16 %v562_v21, %v560_v53  ;;  %781 = vmatprep.mubr.bf16.mxu1 %v1867_v7 }
 0x147   :  { %v869_v22 = vpack.c.bf16 %v563_v55, %v561_v54 }
 0x149   :  { %876 = vmatprep.subr.bf16.mxu0 %v869_v22 }
 0x14a   :  { %877 = vmatpush1.bf16.msra.mxu0 %v868_v57 }
 0x14d   :  { %1717 = vmatmul.mubr.msk.bf16.vlgmr.msra.gmra.mrb[16].mxu1 %vm326_vm0, %v1803_v61  ;;  %1725 = vmatmul.mubr.msk.bf16.vlgmr.msra.gmra.mrb[48].mxu0 %vm326_vm0, %v1803_v61 }
 0x14e   :  { %1160 = vmatpush1.bf16.msra.mxu1 %v2173_v56  ;;  %791 = vmatprep.mubr.bf16.mxu1 %v1867_v7  ;;  %v1805_v56 = vld [vmem:[%s2497_s1 + $0x90] sm:$0xff]  }
 0x14f   :  { %1161 = vmatprep.subr.bf16.mxu1 %v2185_v10  ;;  %912 = vmatprep.mubr.bf16.mxu0 %v1867_v7  ;;  %v1807_v10 = vld [vmem:[%s2497_s1 + $0xa0] sm:$0xff]  }
 0x152   :  { %1162 = vmatpush1.bf16.msra.mxu1 %v2183_v9  ;;  %v1806_v9 = vld [vmem:[%s2497_s1 + $0x98] sm:$0xff]  }
 0x153   :  { %1163 = vmatprep.subr.bf16.mxu1 %v2195_v34  ;;  %v1809_v34 = vld [vmem:[%s2497_s1 + $0xb0] sm:$0xff]  }
 0x155   :  { %1718 = vmatmul.mubr.msk.bf16.gmra.mrb[20].mxu1 %vm326_vm0, %v1804_v62  ;;  %1726 = vmatmul.mubr.msk.bf16.gmra.mrb[52].mxu0 %vm326_vm0, %v1804_v62 }
 0x156   :  { %1164 = vmatpush1.bf16.msra.mxu1 %v2193_v33  ;;  %801 = vmatprep.mubr.bf16.mxu1 %v1867_v7  ;;  %v1808_v33 = vld [vmem:[%s2497_s1 + $0xa8] sm:$0xff]  }
 0x157   :  { %1165 = vmatprep.subr.bf16.mxu1 %v2205_v52  ;;  %922 = vmatprep.mubr.bf16.mxu0 %v1867_v7  ;;  %v1811_v52 = vld [vmem:[%s2497_s1 + $0xc0] sm:$0xff]  }
 0x15a   :  { %1166 = vmatpush1.bf16.msra.mxu1 %v2203_v51  ;;  %v1810_v51 = vld [vmem:[%s2497_s1 + $0xb8] sm:$0xff]  }
 0x15d   :  { %1719 = vmatmul.mubr.msk.bf16.gmra.mrb[24].mxu1 %vm326_vm0, %v1805_v56  ;;  %1727 = vmatmul.mubr.msk.bf16.gmra.mrb[56].mxu0 %vm326_vm0, %v1805_v56 }
 0x15e   :  { %811 = vmatprep.mubr.bf16.mxu1 %v1867_v7  ;;  %932 = vmatprep.mubr.bf16.mxu0 %v1867_v7 }
 0x165   :  { %1720 = vmatmul.mubr.msk.bf16.gmra.mrb[28].mxu1 %vm326_vm0, %v1806_v9  ;;  %1728 = vmatmul.mubr.msk.bf16.gmra.mrb[60].mxu0 %vm326_vm0, %v1806_v9 }
 0x166   :  { %821 = vmatprep.mubr.bf16.mxu1 %v1867_v7  ;;  %942 = vmatprep.mubr.bf16.mxu0 %v1867_v7 }
 0x16d   :  { %1721 = vmatmul.mubr.msk.bf16.gmra.mrb[32].mxu1 %vm326_vm0, %v1807_v10  ;;  %1729 = vmatmul.mubr.msk.bf16.gmra.mrb[64].mxu0 %vm326_vm0, %v1807_v10 }
 0x16e   :  { %831 = vmatprep.mubr.bf16.mxu1 %v1867_v7  ;;  %952 = vmatprep.mubr.bf16.mxu0 %v1867_v7 }
 0x175   :  { %1722 = vmatmul.mubr.msk.bf16.gmra.mrb[36].mxu1 %vm326_vm0, %v1808_v33  ;;  %1730 = vmatmul.mubr.msk.bf16.gmra.mrb[68].mxu0 %vm326_vm0, %v1808_v33 }
 0x176   :  { %841 = vmatprep.mubr.bf16.mxu1 %v1867_v7  ;;  %962 = vmatprep.mubr.bf16.mxu0 %v1867_v7 }
 0x17d   :  { %1723 = vmatmul.mubr.msk.bf16.gmra.mrb[40].mxu1 %vm326_vm0, %v1809_v34  ;;  %1731 = vmatmul.mubr.msk.bf16.gmra.mrb[72].mxu0 %vm326_vm0, %v1809_v34 }
 0x17e   :  { %851 = vmatprep.mubr.bf16.mxu1 %v1867_v7  ;;  %972 = vmatprep.mubr.bf16.mxu0 %v1867_v7 }
 0x185   :  { %1724 = vmatmul.mubr.msk.bf16.gmra.mrb[44].mxu1 %vm326_vm0, %v1810_v51  ;;  %1732 = vmatmul.mubr.msk.bf16.gmra.mrb[76].mxu0 %vm326_vm0, %v1810_v51 }
 0x186   :  { %1191 = vmatprep.mubr.bf16.mxu1 %v1867_v7  ;;  %1624 = vmatprep.mubr.bf16.mxu0 %v1867_v7 }
 0x18d   :  { %1737 = vmatmul.mubr.msk.bf16.vlgmr.msra.gmra.mrb[48].mxu1 %vm326_vm0, %v1811_v52 }
 0x18e   :  { %1201 = vmatprep.mubr.bf16.mxu1 %v1867_v7 }
 0x195   :  { %1738 = vmatmul.mubr.msk.bf16.gmra.mrb[52].mxu1 %vm326_vm0, %v1812_v15 }
 0x196   :  { %1211 = vmatprep.mubr.bf16.mxu1 %v1867_v7 }
 0x19d   :  { %1739 = vmatmul.mubr.msk.bf16.gmra.mrb[56].mxu1 %vm326_vm0, %v1813_v63 }
 0x19e   :  { %1221 = vmatprep.mubr.bf16.mxu1 %v1867_v7 }
 0x1a5   :  { %1740 = vmatmul.mubr.msk.bf16.gmra.mrb[60].mxu1 %vm326_vm0, %v1814_v1 }
 0x1a6   :  { %1508 = vmatprep.mubr.bf16.mxu1 %v1867_v7 }
 0x200   :  { %v638_v17 = vpop.f32.mrb[0].mxu1 }
 0x201   :  { %v640_v25 = vpop.f32.mrb[1].mxu1 }
 0x202   :  { %v642_v2 = vpop.f32.mrb[2].mxu1 }
 0x203   :  { %v644_v3 = vpop.f32.mrb[3].mxu1 }
 0x208   :  { %v648_v4 = vpop.f32.mrb[4].mxu1 }
 0x209   :  { %v650_v6 = vpop.f32.mrb[5].mxu1 }
 0x20a   :  { %v652_v26 = vpop.f32.mrb[6].mxu1 }
 0x20b   :  { %v654_v44 = vpop.f32.mrb[7].mxu1 }
 0x210   :  { %v658_v8 = vpop.f32.mrb[8].mxu1 }
 0x211   :  { %v2333_v11 = vpop.f32.mrb[9].mxu1 }
 0x212   :  { %v2335_v16 = vpop.f32.mrb[10].mxu1 }
 0x213   :  { %v2337_v42 = vpop.f32.mrb[11].mxu1 }
 0x218   :  { %v2339_v13 = vpop.f32.mrb[12].mxu1 }
 0x219   :  { %v2341_v60 = vpop.f32.mrb[13].mxu1 }
 0x21a   :  { %v2343_v23 = vpop.f32.mrb[14].mxu1 }
 0x21b   :  { %v2345_v24 = vpop.f32.mrb[15].mxu1 }
 0x220   :  { %v783_v39 = vpop.f32.mrb[16].mxu1  ;;  %v904_v27 = vpop.f32.mrb[48].mxu0 }
 0x221   :  { %v1232_v18 = vmul.f32 %v783_v39, %v638_v17  ;;  %v1260_v28 = vmul.f32 %v904_v27, %v638_v17  ;;  %v785_v59 = vpop.f32.mrb[17].mxu1  ;;  %v906_v43 = vpop.f32.mrb[49].mxu0 }
 0x222   :  { %v1233_v14 = vmul.f32 %v785_v59, %v640_v25  ;;  %v1261_v29 = vmul.f32 %v906_v43, %v640_v25  ;;  %v787_v30 = vpop.f32.mrb[18].mxu1  ;;  %v908_v31 = vpop.f32.mrb[50].mxu0 }
 0x223   :  { %v1234_v12 = vmul.f32 %v787_v30, %v642_v2  ;;  %v1262_v32 = vmul.f32 %v908_v31, %v642_v2  ;;  %v789_v40 = vpop.f32.mrb[19].mxu1  ;;  %v910_v35 = vpop.f32.mrb[51].mxu0 }
 0x224   :  { %v1235_v19 = vmul.f32 %v789_v40, %v644_v3  ;;  %v1263_v0 = vmul.f32 %v910_v35, %v644_v3 }
 0x225   :  { %v1240_v36 = vadd.f32 %v1234_v12, %v1232_v18  ;;  %v1268_v37 = vadd.f32 %v1262_v32, %v1260_v28 }
 0x226   :  { %v1249_v41 = vadd.f32 %v1235_v19, %v1233_v14  ;;  %v1277_v45 = vadd.f32 %v1263_v0, %v1261_v29 }
 0x228   :  { %v793_v20 = vpop.f32.mrb[20].mxu1  ;;  %v914_v46 = vpop.f32.mrb[52].mxu0 }
 0x229   :  { %v1236_v38 = vmul.f32 %v793_v20, %v648_v4  ;;  %v1264_v47 = vmul.f32 %v914_v46, %v648_v4  ;;  %v795_v48 = vpop.f32.mrb[21].mxu1  ;;  %v916_v5 = vpop.f32.mrb[53].mxu0 }
 0x22a   :  { %v1237_v58 = vmul.f32 %v795_v48, %v650_v6  ;;  %v1265_v49 = vmul.f32 %v916_v5, %v650_v6  ;;  %v797_v50 = vpop.f32.mrb[22].mxu1  ;;  %v918_v53 = vpop.f32.mrb[54].mxu0 }
 0x22b   :  { %v1241_v21 = vadd.f32 %v1240_v36, %v1236_v38  ;;  %v1269_v54 = vadd.f32 %v1268_v37, %v1264_v47  ;;  %v1238_v55 = vmul.f32 %v797_v50, %v652_v26  ;;  %v1266_v57 = vmul.f32 %v918_v53, %v652_v26  ;;  %v799_v22 = vpop.f32.mrb[23].mxu1  ;;  %v920_v61 = vpop.f32.mrb[55].mxu0 }
 0x22c   :  { %v1250_v62 = vadd.f32 %v1249_v41, %v1237_v58  ;;  %v1278_v56 = vadd.f32 %v1277_v45, %v1265_v49  ;;  %v1239_v9 = vmul.f32 %v799_v22, %v654_v44  ;;  %v1267_v10 = vmul.f32 %v920_v61, %v654_v44 }
 0x22d   :  { %v1242_v33 = vadd.f32 %v1241_v21, %v1238_v55  ;;  %v1270_v34 = vadd.f32 %v1269_v54, %v1266_v57 }
 0x22e   :  { %v1251_v51 = vadd.f32 %v1250_v62, %v1239_v9  ;;  %v1279_v52 = vadd.f32 %v1278_v56, %v1267_v10 }
 0x22f   :  { %v1243_v15 = vrot.slane %v1242_v33, 4  ;;  %v1271_v63 = vrot.slane %v1270_v34, 4 }
 0x230   :  { %v1252_v1 = vrot.slane %v1251_v51, 4  ;;  %v1280_v17 = vrot.slane %v1279_v52, 4  ;;  %v803_v25 = vpop.f32.mrb[24].mxu1  ;;  %v924_v2 = vpop.f32.mrb[56].mxu0 }
 0x231   :  { %v1244_v3 = vadd.f32 %v1243_v15, %v1242_v33  ;;  %v1272_v4 = vadd.f32 %v1271_v63, %v1270_v34  ;;  %v1334_v6 = vmul.f32 %v803_v25, %v658_v8  ;;  %v1362_v26 = vmul.f32 %v924_v2, %v658_v8  ;;  %v805_v39 = vpop.f32.mrb[25].mxu1  ;;  %v926_v27 = vpop.f32.mrb[57].mxu0 }
 0x232   :  { %v1253_v18 = vadd.f32 %v1252_v1, %v1251_v51  ;;  %v1281_v28 = vadd.f32 %v1280_v17, %v1279_v52  ;;  %v1335_v44 = vmul.f32 %v805_v39, %v2333_v11  ;;  %v1363_v59 = vmul.f32 %v926_v27, %v2333_v11  ;;  %v807_v43 = vpop.f32.mrb[26].mxu1  ;;  %v928_v14 = vpop.f32.mrb[58].mxu0 }
 0x233   :  { %v1245_v29 = vrot.slane %v1244_v3, 2  ;;  %v1273_v30 = vrot.slane %v1272_v4, 2  ;;  %v1336_v31 = vmul.f32 %v807_v43, %v2335_v16  ;;  %v1364_v12 = vmul.f32 %v928_v14, %v2335_v16  ;;  %v809_v32 = vpop.f32.mrb[27].mxu1  ;;  %v930_v40 = vpop.f32.mrb[59].mxu0 }
 0x234   :  { %v1254_v35 = vrot.slane %v1253_v18, 2  ;;  %v1282_v8 = vrot.slane %v1281_v28, 2  ;;  %v1337_v19 = vmul.f32 %v809_v32, %v2337_v42  ;;  %v1365_v0 = vmul.f32 %v930_v40, %v2337_v42 }
 0x235   :  { %v1246_v36 = vadd.f32 %v1245_v29, %v1244_v3  ;;  %v1274_v37 = vadd.f32 %v1273_v30, %v1272_v4  ;;  %v1342_v41 = vadd.f32 %v1336_v31, %v1334_v6  ;;  %v1370_v11 = vadd.f32 %v1364_v12, %v1362_v26 }
 0x236   :  { %v1255_v45 = vadd.f32 %v1254_v35, %v1253_v18  ;;  %v1283_v20 = vadd.f32 %v1282_v8, %v1281_v28  ;;  %v1351_v46 = vadd.f32 %v1337_v19, %v1335_v44  ;;  %v1379_v38 = vadd.f32 %v1365_v0, %v1363_v59 }
 0x237   :  { %v1247_v47 = vrot.slane %v1246_v36, 1  ;;  %v1275_v48 = vrot.slane %v1274_v37, 1 }
 0x238   :  { %v1256_v5 = vrot.slane %v1255_v45, 1  ;;  %v1284_v16 = vrot.slane %v1283_v20, 1  ;;  %v813_v58 = vpop.f32.mrb[28].mxu1  ;;  %v934_v49 = vpop.f32.mrb[60].mxu0 }
 0x239   :  { %v1248_v50 = vadd.f32 %v1247_v47, %v1246_v36  ;;  %v1276_v53 = vadd.f32 %v1275_v48, %v1274_v37  ;;  %v1338_v21 = vmul.f32 %v813_v58, %v2339_v13  ;;  %v1366_v42 = vmul.f32 %v934_v49, %v2339_v13  ;;  %v815_v54 = vpop.f32.mrb[29].mxu1  ;;  %v936_v55 = vpop.f32.mrb[61].mxu0 }
 0x23a   :  { %v1257_v57 = vadd.f32 %v1256_v5, %v1255_v45  ;;  %v1285_v22 = vadd.f32 %v1284_v16, %v1283_v20  ;;  %v1339_v61 = vmul.f32 %v815_v54, %v2341_v60  ;;  %v1367_v62 = vmul.f32 %v936_v55, %v2341_v60  ;;  %v817_v56 = vpop.f32.mrb[30].mxu1  ;;  %v938_v9 = vpop.f32.mrb[62].mxu0 }
 0x23b   :  { %v1258_v10 = vmul.f32 0.17677669, %v1248_v50  ;;  %v1286_v33 = vmul.f32 0.17677669, %v1276_v53  ;;  %v1343_v34 = vadd.f32 %v1342_v41, %v1338_v21  ;;  %v1371_v51 = vadd.f32 %v1370_v11, %v1366_v42  ;;  %v819_v52 = vpop.f32.mrb[31].mxu1  ;;  %v940_v15 = vpop.f32.mrb[63].mxu0 }
 0x23c   :  { %v1259_v63 = vmul.f32 0.17677669, %v1257_v57  ;;  %v1287_v1 = vmul.f32 0.17677669, %v1285_v22  ;;  %v1352_v17 = vadd.f32 %v1351_v46, %v1339_v61  ;;  %v1380_v13 = vadd.f32 %v1379_v38, %v1367_v62 }
 0x23d   :  { %v1288_v25 = vmax.f32 %v1258_v10, %v1286_v33  ;;  %v1340_v2 = vmul.f32 %v817_v56, %v2343_v23  ;;  %v1368_v3 = vmul.f32 %v938_v9, %v2343_v23  ;;  %v1341_v4 = vmul.f32 %v819_v52, %v2345_v24 }
 0x23e   :  { %v1289_v60 = vmax.f32 %v1259_v63, %v1287_v1  ;;  %v1369_v6 = vmul.f32 %v940_v15, %v2345_v24 }
 0x23f   :  { %v1290_v26 = vsub.f32 %v1258_v10, %v1288_v25  ;;  %v1296_v39 = vsub.f32 %v1286_v33, %v1288_v25  ;;  %v1344_v27 = vadd.f32 %v1343_v34, %v1340_v2  ;;  %v1372_v18 = vadd.f32 %v1371_v51, %v1368_v3  ;;  %v986_v3 = vpop.permute.xlu0 %985 }
 0x240   :  { %v1291_v28 = vsub.f32 %v1259_v63, %v1289_v60  ;;  %v1297_v44 = vsub.f32 %v1287_v1, %v1289_v60  ;;  %v1353_v59 = vadd.f32 %v1352_v17, %v1341_v4  ;;  %v1381_v43 = vadd.f32 %v1380_v13, %v1369_v6  ;;  %v823_v14 = vpop.f32.mrb[32].mxu1  ;;  %v2361_v29 = vpop.f32.mrb[64].mxu0 }
 0x241   :  { %v1292_v30 = vmul.f32 1.442695, %v1290_v26  ;;  %v1298_v31 = vmul.f32 1.442695, %v1296_v39  ;;  %v1345_v12 = vrot.slane %v1344_v27, 4  ;;  %v1373_v23 = vrot.slane %v1372_v18, 4  ;;  %v991_v4 = vpop.permute.xlu1 %990 }
 0x242   :  { %v1294_v32 = vmul.f32 1.442695, %v1291_v28  ;;  %v1300_v40 = vmul.f32 1.442695, %v1297_v44  ;;  %v1354_v35 = vrot.slane %v1353_v59, 4  ;;  %v1382_v8 = vrot.slane %v1381_v43, 4 }
 0x243   :  { %1819 = vpow2.f32 %v1292_v30  ;;  %v1346_v24 = vadd.f32 %v1345_v12, %v1344_v27  ;;  %v1374_v19 = vadd.f32 %v1373_v23, %v1372_v18  ;;  %v2363_v0 = vpop.f32.mrb[33].mxu1  ;;  %v2365_v36 = vpop.f32.mrb[65].mxu0  ;;  %v2385_v27 = vadd.f32 %v986_v3, %v823_v14 }
 0x244   :  { %1821 = vpow2.f32 %v1298_v31  ;;  %v1355_v37 = vadd.f32 %v1354_v35, %v1353_v59  ;;  %v1383_v41 = vadd.f32 %v1382_v8, %v1381_v43  ;;  %v2367_v11 = vpop.f32.mrb[34].mxu1  ;;  %v2369_v45 = vpop.f32.mrb[66].mxu0 }
 0x245   :  { %1823 = vpow2.f32 %v1294_v32  ;;  %v1347_v20 = vrot.slane %v1346_v24, 2  ;;  %v1375_v46 = vrot.slane %v1374_v19, 2  ;;  %v2371_v38 = vpop.f32.mrb[35].mxu1  ;;  %v2373_v47 = vpop.f32.mrb[67].mxu0 }
 0x246   :  { %1825 = vpow2.f32 %v1300_v40  ;;  %v1356_v48 = vrot.slane %v1355_v37, 2  ;;  %v1384_v5 = vrot.slane %v1383_v41, 2 }
 0x247   :  { %v1348_v16 = vadd.f32 %v1347_v20, %v1346_v24  ;;  %v1376_v58 = vadd.f32 %v1375_v46, %v1374_v19  ;;  %v1024_v20 = vadd.f32 %v986_v3, %v2363_v0  ;;  %v1056_v46 = vadd.f32 %v986_v3, %v2365_v36 }
 0x248   :  { %v1357_v49 = vadd.f32 %v1356_v48, %v1355_v37  ;;  %v1385_v50 = vadd.f32 %v1384_v5, %v1383_v41  ;;  %v833_v53 = vpop.f32.mrb[36].mxu1  ;;  %v954_v21 = vpop.f32.mrb[68].mxu0  ;;  %v1055_v37 = vadd.f32 %v986_v3, %v2361_v29  ;;  %v1039_v41 = vmax.f32 %v2385_v27, 0.0 }
 0x249   :  { %v1349_v42 = vrot.slane %v1348_v16, 1  ;;  %v1377_v54 = vrot.slane %v1376_v58, 1  ;;  %v835_v55 = vpop.f32.mrb[37].mxu1  ;;  %v956_v57 = vpop.f32.mrb[69].mxu0  ;;  %v1058_v29 = vadd.f32 %v991_v4, %v2373_v47  ;;  %v1072_v47 = vmax.f32 %v1056_v46, 0.0 }
 0x24a   :  { %v1358_v22 = vrot.slane %v1357_v49, 1  ;;  %v1386_v61 = vrot.slane %v1385_v50, 1  ;;  %v837_v62 = vpop.f32.mrb[38].mxu1  ;;  %v958_v56 = vpop.f32.mrb[70].mxu0  ;;  %v1071_v0 = vmax.f32 %v1055_v37, 0.0 }
 0x24b   :  { %v1350_v9 = vadd.f32 %v1349_v42, %v1348_v16  ;;  %v1378_v10 = vadd.f32 %v1377_v54, %v1376_v58  ;;  %v839_v33 = vpop.f32.mrb[39].mxu1  ;;  %v960_v34 = vpop.f32.mrb[71].mxu0  ;;  %v1025_v16 = vadd.f32 %v991_v4, %v2367_v11  ;;  %v1057_v58 = vadd.f32 %v991_v4, %v2369_v45 }
 0x24c   :  { %v1359_v51 = vadd.f32 %v1358_v22, %v1357_v49  ;;  %v1387_v52 = vadd.f32 %v1386_v61, %v1385_v50  ;;  %v996_v5 = vpop.permute.xlu0 %995  ;;  %v1026_v49 = vadd.f32 %v991_v4, %v2371_v38  ;;  %v1001_v50 = vpop.permute.xlu1 %1000 }
 0x24d   :  { %v2375_v15 = vpop.eup %1819  ;;  %v1360_v63 = vmul.f32 0.17677669, %v1350_v9  ;;  %v1388_v1 = vmul.f32 0.17677669, %v1378_v10  ;;  %v1027_v42 = vadd.f32 %v996_v5, %v833_v53  ;;  %v1059_v54 = vadd.f32 %v996_v5, %v954_v21 }
 0x24e   :  { %v2377_v17 = vpop.eup %1821  ;;  %v1361_v13 = vmul.f32 0.17677669, %v1359_v51  ;;  %v1389_v25 = vmul.f32 0.17677669, %v1387_v52  ;;  %v1028_v22 = vadd.f32 %v996_v5, %v835_v55  ;;  %v1060_v36 = vadd.f32 %v996_v5, %v956_v57 }
 0x24f   :  { %v2379_v2 = vpop.eup %1823  ;;  %v1390_v60 = vmax.f32 %v1360_v63, %v1388_v1  ;;  %v1302_v6 = vadd.f32 %v2377_v17, %v2375_v15  ;;  %v1029_v10 = vadd.f32 %v1001_v50, %v837_v62  ;;  %v1061_v11 = vadd.f32 %v1001_v50, %v958_v56 }
 0x250   :  { %v2383_v26 = vpop.eup %1825  ;;  %v1391_v39 = vmax.f32 %v1361_v13, %v1389_v25  ;;  %v2387_v18 = vpop.f32.mrb[40].mxu1  ;;  %v1030_v51 = vadd.f32 %v1001_v50, %v839_v33  ;;  %v1062_v45 = vadd.f32 %v1001_v50, %v960_v34  ;;  %v1041_v53 = vmax.f32 %v1025_v16, 0.0 }
 0x251   :  { %v2389_v28 = vpop.f32.mrb[72].mxu0  ;;  %v1392_v44 = vsub.f32 %v1360_v63, %v1390_v60  ;;  %v1398_v59 = vsub.f32 %v1388_v1, %v1390_v60  ;;  %1827 = vrcp.f32 %v1302_v6  ;;  %v1303_v43 = vadd.f32 %v2383_v26, %v2379_v2  ;;  %v2393_v30 = vpop.f32.mrb[41].mxu1 }
 0x252   :  { %v2395_v31 = vpop.f32.mrb[73].mxu0  ;;  %v1393_v12 = vsub.f32 %v1361_v13, %v1391_v39  ;;  %v1399_v23 = vsub.f32 %v1389_v25, %v1391_v39  ;;  %v2397_v32 = vpop.f32.mrb[42].mxu1  ;;  %v1040_v63 = vmax.f32 %v1024_v20, 0.0  ;;  %v1073_v21 = vmax.f32 %v1057_v58, 0.0 }
 0x253   :  { %v2399_v14 = vpop.f32.mrb[74].mxu0  ;;  %v1394_v40 = vmul.f32 1.442695, %v1392_v44  ;;  %v1400_v35 = vmul.f32 1.442695, %v1398_v59  ;;  %1829 = vrcp.f32 %v1303_v43  ;;  %v2401_v8 = vpop.f32.mrb[43].mxu1 }
 0x254   :  { %v1396_v24 = vmul.f32 1.442695, %v1393_v12  ;;  %v1402_v19 = vmul.f32 1.442695, %v1399_v23  ;;  %v2407_v48 = vpop.f32.mrb[75].mxu0  ;;  %v1042_v13 = vmax.f32 %v1026_v49, 0.0 }
 0x255   :  { %1831 = vpow2.f32 %v1394_v40  ;;  %v1074_v25 = vmax.f32 %v1058_v29, 0.0  ;;  %v1043_v3 = vmax.f32 %v1027_v42, 0.0  ;;  %v1075_v62 = vmax.f32 %v1059_v54, 0.0 }
 0x256   :  { %1833 = vpow2.f32 %v1400_v35  ;;  %v1044_v60 = vmax.f32 %v1028_v22, 0.0  ;;  %v1076_v6 = vmax.f32 %v1060_v36, 0.0  ;;  %v1045_v27 = vmax.f32 %v1029_v10, 0.0 }
 0x257   :  { %1835 = vpow2.f32 %v1396_v24  ;;  %v1077_v44 = vmax.f32 %v1061_v11, 0.0  ;;  %v1046_v59 = vmax.f32 %v1030_v51, 0.0  ;;  %v1078_v43 = vmax.f32 %v1062_v45, 0.0 }
 0x258   :  { %1837 = vpow2.f32 %v1402_v19  ;;  %v2413_v61 = vpop.f32.mrb[44].mxu1  ;;  %v2415_v9 = vpop.f32.mrb[76].mxu0 }
 0x259   :  { %v2417_v52 = vpop.f32.mrb[45].mxu1  ;;  %v2419_v38 = vpop.f32.mrb[77].mxu0 }
 0x25a   :  { %v2421_v1 = vpop.f32.mrb[46].mxu1  ;;  %v2423_v55 = vpop.f32.mrb[78].mxu0 }
 0x25b   :  { %v1828_v57 = vpop.eup %1827  ;;  %v2425_v56 = vpop.f32.mrb[47].mxu1 }
 0x25c   :  { %v2427_v33 = vpop.f32.mrb[79].mxu0  ;;  %v1306_v34 = vmul.f32 %v1828_v57, %v2375_v15  ;;  %v1316_v4 = vmul.f32 %v1828_v57, %v2377_v17 }
 0x25d   :  { %v1830_v39 = vpop.eup %1829 }
 0x25e   :  { %v1308_v12 = vmul.f32 %v1306_v34, %v1039_v41  ;;  %v1318_v23 = vmul.f32 %v1316_v4, %v1071_v0  ;;  %v1307_v40 = vmul.f32 %v1830_v39, %v2379_v2  ;;  %v1317_v35 = vmul.f32 %v1830_v39, %v2383_v26 }
 0x25f   :  { %v2433_v24 = vpop.eup %1831  ;;  %v1310_v19 = vmul.f32 %v1306_v34, %v1041_v53  ;;  %v1320_v37 = vmul.f32 %v1316_v4, %v1073_v21  ;;  %v1312_v15 = vmul.f32 %v1306_v34, %v1043_v3  ;;  %v1322_v20 = vmul.f32 %v1316_v4, %v1075_v62  ;;  %v1006_v21 = vpop.permute.xlu0 %1005 }
 0x260   :  { %v2435_v17 = vpop.eup %1833  ;;  %v1326_v46 = vadd.f32 %v1318_v23, %v1308_v12  ;;  %v1309_v5 = vmul.f32 %v1307_v40, %v1040_v63  ;;  %v1319_v16 = vmul.f32 %v1317_v35, %v1072_v47  ;;  %v1311_v58 = vmul.f32 %v1307_v40, %v1042_v13  ;;  %v1011_v13 = vpop.permute.xlu1 %1010 }
 0x261   :  { %v2437_v49 = vpop.eup %1835  ;;  %v1328_v41 = vadd.f32 %v1320_v37, %v1310_v19  ;;  %v1321_v50 = vmul.f32 %v1317_v35, %v1074_v25  ;;  %v1330_v29 = vadd.f32 %v1322_v20, %v1312_v15  ;;  %v1313_v2 = vmul.f32 %v1307_v40, %v1044_v60 }
 0x262   :  { %v1838_v42 = vpop.eup %1837  ;;  %v1327_v26 = vadd.f32 %v1319_v16, %v1309_v5  ;;  %v1323_v54 = vmul.f32 %v1317_v35, %v1076_v6  ;;  %v1314_v0 = vmul.f32 %v1306_v34, %v1045_v27  ;;  %v1324_v22 = vmul.f32 %v1316_v4, %v1077_v44 }
 0x263   :  { %v1436_v36 = vpack.c.bf16 %v1328_v41, %v1326_v46  ;;  %v1329_v10 = vadd.f32 %v1321_v50, %v1311_v58  ;;  %v1315_v11 = vmul.f32 %v1307_v40, %v1046_v59  ;;  %v1325_v51 = vmul.f32 %v1317_v35, %v1078_v43  ;;  %v1016_v39 = vpop.permute.xlu0 %1015 }
 0x264   :  { %v1331_v45 = vadd.f32 %v1323_v54, %v1313_v2  ;;  %v1332_v53 = vadd.f32 %v1324_v22, %v1314_v0  ;;  %v1404_v63 = vadd.f32 %v2435_v17, %v2433_v24  ;;  %v1405_v47 = vadd.f32 %v1838_v42, %v2437_v49  ;;  %v1021_v12 = vpop.permute.xlu1 %1020 }
 0x265   :  { %v1333_v57 = vadd.f32 %v1325_v51, %v1315_v11  ;;  %v1437_v3 = vpack.c.bf16 %v1329_v10, %v1327_v26  ;;  %v1031_v34 = vadd.f32 %v1006_v21, %v2387_v18  ;;  %v1063_v4 = vadd.f32 %v1006_v21, %v2389_v28 }
 0x266   :  { %v1438_v25 = vpack.c.bf16 %v1332_v53, %v1330_v29  ;;  %1839 = vrcp.f32 %v1404_v63  ;;  %v1032_v60 = vadd.f32 %v1006_v21, %v2393_v30  ;;  %v1064_v6 = vadd.f32 %v1006_v21, %v2395_v31 }
 0x267   :  { %1841 = vrcp.f32 %v1405_v47  ;;  %v1439_v62 = vpack.c.bf16 %v1333_v57, %v1331_v45  ;;  %1476 = vmatprep.subr.bf16.mxu1 %v1437_v3  ;;  %v1033_v27 = vadd.f32 %v1011_v13, %v2397_v32  ;;  %v1065_v44 = vadd.f32 %v1011_v13, %v2399_v14 }
 0x268   :  { %1477 = vmatpush1.bf16.msra.mxu1 %v1436_v36  ;;  %v1034_v59 = vadd.f32 %v1011_v13, %v2401_v8  ;;  %v1066_v43 = vadd.f32 %v1011_v13, %v2407_v48  ;;  %v1035_v18 = vadd.f32 %v1016_v39, %v2413_v61  ;;  %v1067_v28 = vadd.f32 %v1016_v39, %v2415_v9 }
 0x269   :  { %1478 = vmatprep.subr.bf16.mxu1 %v1439_v62  ;;  %v1036_v23 = vadd.f32 %v1016_v39, %v2417_v52  ;;  %v1068_v30 = vadd.f32 %v1016_v39, %v2419_v38  ;;  %v1047_v31 = vmax.f32 %v1031_v34, 0.0  ;;  %v1079_v40 = vmax.f32 %v1063_v4, 0.0 }
 0x26a   :  { %v1037_v35 = vadd.f32 %v1021_v12, %v2421_v1  ;;  %v1069_v32 = vadd.f32 %v1021_v12, %v2423_v55  ;;  %v1048_v14 = vmax.f32 %v1032_v60, 0.0  ;;  %v1080_v8 = vmax.f32 %v1064_v6, 0.0 }
 0x26b   :  { %v1038_v48 = vadd.f32 %v1021_v12, %v2425_v56  ;;  %v1070_v19 = vadd.f32 %v1021_v12, %v2427_v33  ;;  %v1049_v61 = vmax.f32 %v1033_v27, 0.0  ;;  %v1081_v37 = vmax.f32 %v1065_v44, 0.0  ;;  %v1815_v27 = vld [vmem:[%s2497_s1 + $0xe0] sm:$0xff]   ;;  %v1816_v44 = vld [vmem:[%s2497_s1 + $0xe8] sm:$0xff]   ;;  %v1090_v12 = vpop.permute.xlu0 %1089 }
 0x26c   :  { %1479 = vmatpush1.bf16.msra.mxu1 %v1438_v25  ;;  %v1050_v9 = vmax.f32 %v1034_v59, 0.0  ;;  %v1082_v15 = vmax.f32 %v1066_v43, 0.0  ;;  %v1051_v20 = vmax.f32 %v1035_v18, 0.0  ;;  %v1083_v38 = vmax.f32 %v1067_v28, 0.0  ;;  %v1817_v59 = vld [vmem:[%s2497_s1 + $0xf0] sm:$0xff]   ;;  %v1818_v43 = vld [vmem:[%s2497_s1 + $0xf8] sm:$0xff]  }
 0x26d   :  { %v1052_v46 = vmax.f32 %v1036_v23, 0.0  ;;  %v1084_v5 = vmax.f32 %v1068_v30, 0.0  ;;  %v1053_v58 = vmax.f32 %v1037_v35, 0.0  ;;  %v1085_v41 = vmax.f32 %v1069_v32, 0.0  ;;  %v1095_v30 = vpop.permute.xlu1 %1094 }
 0x26e   :  { %v1054_v33 = vmax.f32 %v1038_v48, 0.0  ;;  %v1086_v29 = vmax.f32 %v1070_v19, 0.0 }
 0x270   :  { %v1840_v52 = vpop.eup %1839 }
 0x271   :  { %v1842_v16 = vpop.eup %1841  ;;  %v1408_v1 = vmul.f32 %v1840_v52, %v2433_v24  ;;  %v1418_v55 = vmul.f32 %v1840_v52, %v2435_v17 }
 0x272   :  { %v1409_v56 = vmul.f32 %v1842_v16, %v2437_v49  ;;  %v1419_v50 = vmul.f32 %v1842_v16, %v1838_v42 }
 0x273   :  { %v1410_v2 = vmul.f32 %v1408_v1, %v1047_v31  ;;  %v1420_v26 = vmul.f32 %v1418_v55, %v1079_v40  ;;  %v1412_v54 = vmul.f32 %v1408_v1, %v1049_v61  ;;  %v1422_v0 = vmul.f32 %v1418_v55, %v1081_v37  ;;  %v1100_v37 = vpop.permute.xlu0 %1099 }
 0x274   :  { %v1411_v22 = vmul.f32 %v1409_v56, %v1048_v14  ;;  %v1421_v36 = vmul.f32 %v1419_v50, %v1080_v8  ;;  %v1413_v10 = vmul.f32 %v1409_v56, %v1050_v9  ;;  %v1423_v11 = vmul.f32 %v1419_v50, %v1082_v15 }
 0x275   :  { %v1428_v51 = vadd.f32 %v1420_v26, %v1410_v2  ;;  %v1430_v45 = vadd.f32 %v1422_v0, %v1412_v54  ;;  %v1414_v24 = vmul.f32 %v1408_v1, %v1051_v20  ;;  %v1424_v53 = vmul.f32 %v1418_v55, %v1083_v38  ;;  %v1105_v38 = vpop.permute.xlu1 %1104 }
 0x276   :  { %v1429_v17 = vadd.f32 %v1421_v36, %v1411_v22  ;;  %v1431_v63 = vadd.f32 %v1423_v11, %v1413_v10  ;;  %v1415_v47 = vmul.f32 %v1409_v56, %v1052_v46  ;;  %v1425_v21 = vmul.f32 %v1419_v50, %v1084_v5 }
 0x277   :  { %v1440_v49 = vpack.c.bf16 %v1430_v45, %v1428_v51  ;;  %v1432_v42 = vadd.f32 %v1424_v53, %v1414_v24  ;;  %v1416_v57 = vmul.f32 %v1408_v1, %v1053_v58  ;;  %v1426_v13 = vmul.f32 %v1418_v55, %v1085_v41 }
 0x278   :  { %v1433_v25 = vadd.f32 %v1425_v21, %v1415_v47  ;;  %v1417_v3 = vmul.f32 %v1409_v56, %v1054_v33  ;;  %v1427_v62 = vmul.f32 %v1419_v50, %v1086_v29  ;;  %v1441_v34 = vpack.c.bf16 %v1431_v63, %v1429_v17  ;;  %v1110_v29 = vpop.permute.xlu0 %1109 }
 0x279   :  { %v1434_v4 = vadd.f32 %v1426_v13, %v1416_v57  ;;  %v1115_v22 = vpop.permute.xlu1 %1114 }
 0x27a   :  { %v1435_v60 = vadd.f32 %v1427_v62, %v1417_v3  ;;  %1480 = vmatprep.subr.bf16.mxu1 %v1441_v34 }
 0x27b   :  { %v1442_v6 = vpack.c.bf16 %v1434_v4, %v1432_v42  ;;  %1481 = vmatpush1.bf16.msra.mxu1 %v1440_v49 }
 0x27c   :  { %v1443_v39 = vpack.c.bf16 %v1435_v60, %v1433_v25  ;;  %v1120_v21 = vpop.permute.xlu0 %1119 }
 0x27d   :  { %v1125_v25 = vpop.permute.xlu1 %1124 }
 0x27e   :  { %1482 = vmatprep.subr.bf16.mxu1 %v1443_v39 }
 0x27f   :  { %1483 = vmatpush1.bf16.msra.mxu1 %v1442_v6 }
 0x282   :  { %1745 = vmatmul.mubr.msk.bf16.vlgmr.msra.gmra.mrb[48].mxu1 %vm326_vm0, %v1815_v27 }
 0x283   :  { %1518 = vmatprep.mubr.bf16.mxu1 %v1867_v7 }
 0x28a   :  { %1746 = vmatmul.mubr.msk.bf16.gmra.mrb[52].mxu1 %vm326_vm0, %v1816_v44 }
 0x28b   :  { %1528 = vmatprep.mubr.bf16.mxu1 %v1867_v7 }
 0x292   :  { %1747 = vmatmul.mubr.msk.bf16.gmra.mrb[56].mxu1 %vm326_vm0, %v1817_v59 }
 0x293   :  { %1538 = vmatprep.mubr.bf16.mxu1 %v1867_v7 }
 0x29a   :  { %1748 = vmatmul.mubr.msk.bf16.gmra.mrb[60].mxu1 %vm326_vm0, %v1818_v43 }
 0x355   :  { %v1510_v18 = vpop.f32.mrb[48].mxu1 }
 0x356   :  { %v1750_v28 = vadd.f32 %v1510_v18, %v1090_v12  ;;  %v1512_v23 = vpop.f32.mrb[49].mxu1  ;;  %v1868_v18 = vmov 1966171168  }
 0x357   :  { %v1751_v31 = vadd.f32 %v1512_v23, %v1090_v12  ;;  %v1514_v40 = vpop.f32.mrb[50].mxu1  ;;  %v96_v12 = vld [vmem:[%s2497_s1 + $0x100] sm:$0xf]  ;;  %v1646_v23 = vlaneseq  ;;  %s1843_s1 = scalar_lea.vmem %s1670_s24, 32 }
 0x358   :  { %v1752_v35 = vadd.f32 %v1514_v40, %v1095_v30  ;;  %v1516_v32 = vpop.f32.mrb[51].mxu1  ;;  %v1565_v8 = vmax.f32 %v1750_v28, 0.0  ;;  %v1644_v28 = vunpack.c.l.s4 %v1868_v18  ;;  %v1636_v40 = vpop.permute.xlu0 %1635  ;;  %p1844_p0 = scmp.ne.s32.totalorder %s1670_s24, %s1843_s1  ;;  %p1849_p2 = scmp.lt.s32.totalorder %s1843_s1, %s1843_s1 }
 0x359   :  { %v1753_v14 = vadd.f32 %v1516_v32, %v1095_v30  ;;  %v1566_v19 = vmax.f32 %v1751_v31, 0.0  ;;  %v1647_v31 = vshrl.u32 %v1646_v23, 7  ;;  %vm1660_vm1 = vcmp.lt.s32.totalorder %v1646_v23, 256 }
 0x35a   :  { %v1567_v48 = vmax.f32 %v1752_v35, 0.0  ;;  %v1645_v30 = vunpack.c.0.s8 %v1644_v28  ;;  %p1850_p3 = por %p1849_p2, %p1848_p1 }
 0x35b   :  { %v1568_v7 = vmax.f32 %v1753_v14, 0.0 }
 0x35c   :  { %v1581_v61 = vpack.c.bf16 %v1567_v48, %v1565_v8  ;;  %v1648_v48 = vsub.s32 %v1645_v30, %v1647_v31  ;;  %p1851_p4 = pnand %p1850_p3, %p1844_p0 }
 0x35d   :  { %v1582_v9 = vpack.c.bf16 %v1568_v7, %v1566_v19  ;;  %v1520_v15 = vpop.f32.mrb[52].mxu1 }
 0x35e   :  { %v1754_v52 = vadd.f32 %v1520_v15, %v1100_v37  ;;  %v1522_v20 = vpop.f32.mrb[53].mxu1 }
 0x35f   :  { %v1755_v46 = vadd.f32 %v1522_v20, %v1100_v37  ;;  %v1524_v5 = vpop.f32.mrb[54].mxu1  ;;  %1592 = vmatprep.subr.bf16.mxu0 %v1582_v9 }
 0x360   :  { %v1756_v16 = vadd.f32 %v1524_v5, %v1105_v38  ;;  %v1526_v1 = vpop.f32.mrb[55].mxu1  ;;  %1593 = vmatpush1.bf16.msra.mxu0 %v1581_v61  ;;  %v1569_v58 = vmax.f32 %v1754_v52, 0.0 }
 0x361   :  { %v1757_v55 = vadd.f32 %v1526_v1, %v1105_v38  ;;  %v1570_v56 = vmax.f32 %v1755_v46, 0.0 }
 0x362   :  { %v1571_v41 = vmax.f32 %v1756_v16, 0.0 }
 0x363   :  { %v1572_v50 = vmax.f32 %v1757_v55, 0.0 }
 0x364   :  { %v1583_v33 = vpack.c.bf16 %v1571_v41, %v1569_v58 }
 0x365   :  { %v1584_v2 = vpack.c.bf16 %v1572_v50, %v1570_v56  ;;  %v1530_v26 = vpop.f32.mrb[56].mxu1 }
 0x366   :  { %v1758_v54 = vadd.f32 %v1530_v26, %v1110_v29  ;;  %v1532_v0 = vpop.f32.mrb[57].mxu1 }
 0x367   :  { %v1759_v36 = vadd.f32 %v1532_v0, %v1110_v29  ;;  %v1534_v10 = vpop.f32.mrb[58].mxu1  ;;  %1594 = vmatprep.subr.bf16.mxu0 %v1584_v2 }
 0x368   :  { %v1760_v11 = vadd.f32 %v1534_v10, %v1115_v22  ;;  %v1536_v51 = vpop.f32.mrb[59].mxu1  ;;  %1595 = vmatpush1.bf16.msra.mxu0 %v1583_v33  ;;  %v1573_v24 = vmax.f32 %v1758_v54, 0.0 }
 0x369   :  { %v1761_v45 = vadd.f32 %v1536_v51, %v1115_v22  ;;  %v1574_v17 = vmax.f32 %v1759_v36, 0.0 }
 0x36a   :  { %v1575_v53 = vmax.f32 %v1760_v11, 0.0 }
 0x36b   :  { %v1576_v63 = vmax.f32 %v1761_v45, 0.0 }
 0x36c   :  { %v1585_v47 = vpack.c.bf16 %v1575_v53, %v1573_v24 }
 0x36d   :  { %v1586_v49 = vpack.c.bf16 %v1576_v63, %v1574_v17  ;;  %v1540_v42 = vpop.f32.mrb[60].mxu1 }
 0x36e   :  { %v1762_v57 = vadd.f32 %v1540_v42, %v1120_v21  ;;  %v1542_v13 = vpop.f32.mrb[61].mxu1 }
 0x36f   :  { %v1763_v3 = vadd.f32 %v1542_v13, %v1120_v21  ;;  %v1544_v62 = vpop.f32.mrb[62].mxu1  ;;  %1596 = vmatprep.subr.bf16.mxu0 %v1586_v49 }
 0x370   :  { %v1764_v34 = vadd.f32 %v1544_v62, %v1125_v25  ;;  %v1546_v4 = vpop.f32.mrb[63].mxu1  ;;  %1597 = vmatpush1.bf16.msra.mxu0 %v1585_v47  ;;  %v1577_v6 = vmax.f32 %v1762_v57, 0.0 }
 0x371   :  { %v1765_v60 = vadd.f32 %v1546_v4, %v1125_v25  ;;  %v1578_v27 = vmax.f32 %v1763_v3, 0.0 }
 0x372   :  { %v1579_v39 = vmax.f32 %v1764_v34, 0.0 }
 0x373   :  { %v1580_v44 = vmax.f32 %v1765_v60, 0.0 }
 0x374   :  { %v1587_v59 = vpack.c.bf16 %v1579_v39, %v1577_v6 }
 0x375   :  { %v1588_v43 = vpack.c.bf16 %v1580_v44, %v1578_v27 }
 0x377   :  { %1598 = vmatprep.subr.bf16.mxu0 %v1588_v43 }
 0x378   :  { %1599 = vmatpush1.bf16.msra.mxu0 %v1587_v59 }
 0x37b   :  { %1749 = vmatmul.mubr.msk.bf16.vlgmr.msra.gmra.mrb[80].mxu0 %vm326_vm0, %v96_v12 }
 0x44e   :  { %v1626_v35 = vpop.f32.mrb[80].mxu0 }
 0x44f   :  { %v1638_v32 = vadd.f32 %v1636_v40, %v1626_v35  ;;  %v1628_v14 = vpop.f32.mrb[81].mxu0 }
 0x450   :  { %v1639_v8 = vadd.f32 %v1636_v40, %v1628_v14  ;;  %v1630_v19 = vpop.f32.mrb[82].mxu0 }
 0x451   :  { %v1631_v7 = vpop.f32.mrb[83].mxu0 }
 0x452   :  { %v1642_v61 = vcombine.low %v1638_v32, %v1639_v8 }
 0x454   :  { %v1649_v37 = vrot.slane %v1642_v61, %v1648_v48 }
 0x456   :  { %v1656_v9 = vrot.slane %v1649_v37, %v1648_v48 }
 0x458   :  { %1662 = vst.msk [vmem:[#allocation2] sm:$0x3] %vm1660_vm1, %v1656_v9 }
 0x459   :  { %1854 = shalt.err (!%p1851_p4)
}
 0x45a   :  { %s1855_s26 = scalar_lea.hbm %s2499_s3, 32 }
 0x45b   :  { %p1856_p5 = scmp.ne.s32.totalorder %s2499_s3, %s1855_s26  ;;  %p1859_p6 = scmp.lt.u32.totalorder %s1855_s26, %s2499_s3 }
 0x45d   :  { %p1861_p7 = pnand %p1859_p6, %p1856_p5 }
 0x45f   :  { %1864 = shalt.err (!%p1861_p7)
}
 0x460   :  { %1672 = dma.vmem_to_hbm [thread:$0]  %s1670_s24, 32, %s2499_s3, [#allocation3]  }
 0x461   :  { %1865 = dma.done.wait [#allocation3], 32  }
 0x462   :  { %1866 = vsyncadd [#allocation3], 4294967264 }
 0x463   :  { %1676 = vsyncpa [#allocation3], 1 }

</bundles_post_ra>
